<compile_context>
chip_gen: v5e
topology: v5e:2x2
jax: 0.10.0
libtpu: 0.0.40
codegen_flags: <defaults>
</compile_context>

<pallas_src>
import functools

import numpy as np
import jax
import jax.numpy as jnp
from jax import lax
from jax.experimental import pallas as pl
from jax.experimental.pallas import tpu as pltpu


# ----------------------------------------------------------------------------
# Fused kernel: conv1+ReLU+MaxPool -> conv2+ReLU -> AdaptiveAvgPool -> fc1/fc2
# ----------------------------------------------------------------------------
def _density_fused_kernel(xt_ref, w1_ref, b1_ref, w2_ref, b2_ref, p_ref,
                          wf1_ref, bf1_ref, wf2_ref, bf2_ref, o_ref,
                          y1pad_ref, *, W2):
    """Processes one image per grid step.

    xt_ref   : (1, 4, S1, 9*Cin) bf16  conv1 K-concat taps; dim1 = 2x2-pool offset
    w1_ref   : (9*Cin, 32) bf16        conv1 weight, rows ordered (dy, dx, cin)
    b1_ref   : (1, 32)  f32
    w2_ref   : (288, 64) bf16          conv2 weight, rows ordered (dy, dx, ch)
    b2_ref   : (1, 64)  f32
    p_ref    : (S_out, S1) bf16        adaptive-avg-pool matrix (PyTorch bins)
    wf1_ref  : (64, 512) bf16 ; bf1_ref: (1, 512) f32
    wf2_ref  : (512, D)  bf16 ; bf2_ref: (1, D)   f32
    o_ref    : (1, S_out, D) f32
    y1pad_ref: VMEM ((H2+4)*W2, 32) bf16 scratch -- stage-1 output with 2 zero
               conv-rows of padding above/below (in-kernel inter-stage padding)
    """
    S1 = xt_ref.shape[2]
    PAD = 2 * W2

    # ---- stage 1: conv1 as 4x (S1,36)@(36,32) + 2x2 max-pool ----------------
    best = jnp.dot(xt_ref[0, 0], w1_ref[...], preferred_element_type=jnp.float32)
    for k in range(1, 4):
        best = jnp.maximum(
            best,
            jnp.dot(xt_ref[0, k], w1_ref[...], preferred_element_type=jnp.float32))
    # shared bias + monotone ReLU commute with the max over the pool window
    y1 = jnp.maximum(best + b1_ref[...], 0.0).astype(jnp.bfloat16)      # (S1, 32)

    # ---- inter-stage row padding in VMEM (no HBM round trip) ----------------
    zero_rows = jnp.zeros((PAD, 32), jnp.bfloat16)
    y1pad_ref[pl.ds(0, PAD), :] = zero_rows
    y1pad_ref[pl.ds(PAD, S1), :] = y1
    y1pad_ref[pl.ds(PAD + S1, PAD), :] = zero_rows

    # ---- stage 2: conv2 as one (S1, 288) @ (288, 64) matmul -----------------
    col = lax.broadcasted_iota(jnp.int32, (S1, 1), 0) % W2
    not_first = col != 0            # dx=0 tap would wrap to the previous row
    not_last = col != (W2 - 1)      # dx=2 tap would wrap to the next row
    pieces = []
    for dy in range(3):
        for dx in range(3):
            start = (dy + 1) * W2 + (dx - 1)
            L = y1pad_ref[pl.ds(start, S1), :]
            if dx == 0:
                L = jnp.where(not_first, L, jnp.zeros_like(L))
            elif dx == 2:
                L = jnp.where(not_last, L, jnp.zeros_like(L))
            pieces.append(L)
    lhs2 = jnp.concatenate(pieces, axis=1)                              # (S1, 288)
    y2 = jnp.dot(lhs2, w2_ref[...], preferred_element_type=jnp.float32)
    y2 = jnp.maximum(y2 + b2_ref[...], 0.0).astype(jnp.bfloat16)        # (S1, 64)

    # ---- adaptive average pool (exact PyTorch bins), bf16 ops / f32 acc -----
    z = jnp.dot(p_ref[...], y2,
                preferred_element_type=jnp.float32).astype(jnp.bfloat16)  # (S_out,64)

    # ---- fc1 (1x1 conv) + ReLU + fc2 ----------------------------------------
    h = jnp.dot(z, wf1_ref[...], preferred_element_type=jnp.float32) + bf1_ref[...]
    h = jnp.maximum(h, 0.0).astype(jnp.bfloat16)
    o_ref[0] = (jnp.dot(h, wf2_ref[...], preferred_element_type=jnp.float32)
                + bf2_ref[...])


# ----------------------------------------------------------------------------
# Host-side helpers (pure XLA glue; traced once under jit)
# ----------------------------------------------------------------------------
@functools.lru_cache(maxsize=None)
def _adaptive_pool_matrix(in_h, in_w, out_h, out_w):
    """Row-stochastic (out_h*out_w, in_h*in_w) matrix reproducing PyTorch's
    nn.AdaptiveAvgPool2d bin boundaries over a row-major flattened map."""
    P = np.zeros((out_h * out_w, in_h * in_w), np.float32)
    for oh in range(out_h):
        hs = (oh * in_h) // out_h
        he = -(-((oh + 1) * in_h) // out_h)
        for ow in range(out_w):
            ws = (ow * in_w) // out_w
            we = -(-((ow + 1) * in_w) // out_w)
            inv = 1.0 / float((he - hs) * (we - ws))
            for h in range(hs, he):
                for w in range(ws, we):
                    P[oh * out_w + ow, h * in_w + w] = inv
    return P


def _conv1_tap_tensor(x_nhwc):
    """(B, H, W, Cin) -> (B, 4, H2*W2, 9*Cin) bf16 conv1 taps.

    dim1 indexes the 2x2 max-pool window offset (k = 2*p + q); the last dim
    K-concatenates the 3x3 taps (dy-major, then dx, then Cin) so conv1 becomes
    a single K=9*Cin matmul per pool offset.  At Cin=4 this costs about the
    same HBM/VMEM as a 36-channel input (NOT a 9x-of-32-channels im2col).
    """
    B, H, W, Cin = x_nhwc.shape
    H2, W2 = H // 2, W // 2
    xp = jnp.pad(x_nhwc, ((0, 0), (1, 1), (1, 1), (0, 0)))
    offsets = []
    for p in range(2):
        for q in range(2):
            taps = [xp[:, p + dy:p + dy + H - 1:2, q + dx:q + dx + W - 1:2, :]
                    for dy in range(3) for dx in range(3)]   # 9 x (B, H2, W2, Cin)
            t = jnp.concatenate(taps, axis=-1)               # (B, H2, W2, 9*Cin)
            offsets.append(t.reshape(B, H2 * W2, 9 * Cin))
    return jnp.stack(offsets, axis=1)                        # (B, 4, S1, 9*Cin)


@functools.partial(jax.jit, static_argnames=("out_h", "out_w"))
def density_estimation_forward(x_nchw, params, *, out_h, out_w):
    """Forward pass of DensityEstimationLayer; x is NCHW like the PyTorch module."""
    x = jnp.transpose(x_nchw, (0, 2, 3, 1)).astype(jnp.bfloat16)    # NCHW -> NHWC
    B, H, W, Cin = x.shape
    assert H % 2 == 0 and W % 2 == 0, "MaxPool2d(2,2) path assumes even H, W"
    H2, W2 = H // 2, W // 2
    S1 = H2 * W2
    S_out = out_h * out_w
    hidden = params["wf1"].shape[-1]
    out_dim = params["wf2"].shape[-1]

    xt = _conv1_tap_tensor(x)                                       # (B, 4, S1, 36)

    w1 = params["w1"].astype(jnp.bfloat16).reshape(9 * Cin, 32)
    b1 = params["b1"].astype(jnp.float32).reshape(1, 32)
    w2 = params["w2"].astype(jnp.bfloat16).reshape(9 * 32, 64)
    b2 = params["b2"].astype(jnp.float32).reshape(1, 64)
    wf1 = params["wf1"].astype(jnp.bfloat16)
    bf1 = params["bf1"].astype(jnp.float32).reshape(1, hidden)
    wf2 = params["wf2"].astype(jnp.bfloat16)
    bf2 = params["bf2"].astype(jnp.float32).reshape(1, out_dim)
    pmat = jnp.asarray(_adaptive_pool_matrix(H2, W2, out_h, out_w),
                       dtype=jnp.bfloat16)                          # (S_out, S1)

    return pl.pallas_call(
        functools.partial(_density_fused_kernel, W2=W2),
        out_shape=jax.ShapeDtypeStruct((B, S_out, out_dim), jnp.float32),
        grid=(B,),
        in_specs=[
            pl.BlockSpec((1, 4, S1, 9 * Cin), lambda b: (b, 0, 0, 0)),
            pl.BlockSpec((9 * Cin, 32), lambda b: (0, 0)),
            pl.BlockSpec((1, 32), lambda b: (0, 0)),
            pl.BlockSpec((9 * 32, 64), lambda b: (0, 0)),
            pl.BlockSpec((1, 64), lambda b: (0, 0)),
            pl.BlockSpec((S_out, S1), lambda b: (0, 0)),
            pl.BlockSpec((64, hidden), lambda b: (0, 0)),
            pl.BlockSpec((1, hidden), lambda b: (0, 0)),
            pl.BlockSpec((hidden, out_dim), lambda b: (0, 0)),
            pl.BlockSpec((1, out_dim), lambda b: (0, 0)),
        ],
        out_specs=pl.BlockSpec((1, S_out, out_dim), lambda b: (b, 0, 0)),
        scratch_shapes=[pltpu.VMEM(((H2 + 4) * W2, 32), jnp.bfloat16)],
        compiler_params=pltpu.CompilerParams(
            dimension_semantics=("parallel",)),
    )(xt, w1, b1, w2, b2, pmat, wf1, bf1, wf2, bf2)


# ----------------------------------------------------------------------------
# Pure-JAX f32 reference (independent path, exact PyTorch adaptive-pool bins)
# ----------------------------------------------------------------------------
def reference_forward(x_nchw, params, out_h, out_w):
    x = jnp.transpose(x_nchw, (0, 2, 3, 1)).astype(jnp.float32)
    dn = ("NHWC", "HWIO", "NHWC")
    hi = lax.Precision.HIGHEST
    y = lax.conv_general_dilated(x, params["w1"], (1, 1), "SAME",
                                 dimension_numbers=dn, precision=hi) + params["b1"]
    y = jnp.maximum(y, 0.0)
    y = lax.reduce_window(y, -jnp.inf, lax.max, (1, 2, 2, 1), (1, 2, 2, 1), "VALID")
    y = lax.conv_general_dilated(y, params["w2"], (1, 1), "SAME",
                                 dimension_numbers=dn, precision=hi) + params["b2"]
    y = jnp.maximum(y, 0.0)
    B, Hp, Wp, C = y.shape
    pooled = []
    for oh in range(out_h):
        hs, he = (oh * Hp) // out_h, -(-((oh + 1) * Hp) // out_h)
        for ow in range(out_w):
            ws, we = (ow * Wp) // out_w, -(-((ow + 1) * Wp) // out_w)
            pooled.append(jnp.mean(y[:, hs:he, ws:we, :], axis=(1, 2)))
    z = jnp.stack(pooled, axis=1)                                   # (B, S_out, 64)
    h = jnp.maximum(jnp.einsum("bsc,cd->bsd", z, params["wf1"], precision=hi)
                    + params["bf1"], 0.0)
    return jnp.einsum("bsd,de->bse", h, params["wf2"], precision=hi) + params["bf2"]


# ----------------------------------------------------------------------------
if __name__ == "__main__":
    B, Cin, H, W = 2, 4, 16, 16
    out_dim, out_h, out_w = 32, 2, 2

    key = jax.random.PRNGKey(0)
    ks = jax.random.split(key, 9)
    params = {
        "w1": 0.1 * jax.random.normal(ks[0], (3, 3, Cin, 32), jnp.float32),
        "b1": 0.1 * jax.random.normal(ks[1], (32,), jnp.float32),
        "w2": 0.1 * jax.random.normal(ks[2], (3, 3, 32, 64), jnp.float32),
        "b2": 0.1 * jax.random.normal(ks[3], (64,), jnp.float32),
        "wf1": 0.1 * jax.random.normal(ks[4], (64, 512), jnp.float32),
        "bf1": 0.1 * jax.random.normal(ks[5], (512,), jnp.float32),
        "wf2": 0.1 * jax.random.normal(ks[6], (512, out_dim), jnp.float32),
        "bf2": 0.1 * jax.random.normal(ks[7], (out_dim,), jnp.float32),
    }
    x = jax.random.normal(ks[8], (B, Cin, H, W), jnp.float32)

    out = density_estimation_forward(x, params, out_h=out_h, out_w=out_w)
    out = jax.block_until_ready(out)
    assert out.shape == (B, out_h * out_w, out_dim), out.shape

    ref = jax.block_until_ready(reference_forward(x, params, out_h, out_w))
    # bf16 operands with f32 accumulation -> compare against the f32 reference
    # with a bf16-appropriate tolerance.
    np.testing.assert_allclose(np.asarray(out), np.asarray(ref),
                               rtol=2e-2, atol=2e-2)

    print("KERNEL_OK")
</pallas_src>

<mosaic_0001>
module attributes {stable_mosaic.version = 11 : i64} {
  func.func @_density_fused_kernel(%arg0: i32, %arg1: memref<1x4x64x36xbf16, #tpu.memory_space<vmem>>, %arg2: memref<36x32xbf16, #tpu.memory_space<vmem>>, %arg3: memref<1x32xf32, #tpu.memory_space<vmem>>, %arg4: memref<288x64xbf16, #tpu.memory_space<vmem>>, %arg5: memref<1x64xf32, #tpu.memory_space<vmem>>, %arg6: memref<4x64xbf16, #tpu.memory_space<vmem>>, %arg7: memref<64x512xbf16, #tpu.memory_space<vmem>>, %arg8: memref<1x512xf32, #tpu.memory_space<vmem>>, %arg9: memref<512x32xbf16, #tpu.memory_space<vmem>>, %arg10: memref<1x32xf32, #tpu.memory_space<vmem>>, %arg11: memref<1x4x32xf32, #tpu.memory_space<vmem>>, %arg12: memref<96x32xbf16, #tpu.memory_space<vmem>>) attributes {dimension_semantics = [#tpu.dimension_semantics<parallel>], iteration_bounds = array<i64: 2>, scalar_prefetch = 0 : i64, scratch_operands = 1 : i64, tpu.core_type = #tpu.core_type<tc>, window_params = [{transform_indices = @transform_0, window_bounds = array<i64: 1, 4, 64, 36>}, {pipeline_mode = #tpu.pipeline_mode<synchronous>, transform_indices = @transform_1, window_bounds = array<i64: 36, 32>}, {pipeline_mode = #tpu.pipeline_mode<synchronous>, transform_indices = @transform_2, window_bounds = array<i64: 1, 32>}, {pipeline_mode = #tpu.pipeline_mode<synchronous>, transform_indices = @transform_3, window_bounds = array<i64: 288, 64>}, {pipeline_mode = #tpu.pipeline_mode<synchronous>, transform_indices = @transform_4, window_bounds = array<i64: 1, 64>}, {pipeline_mode = #tpu.pipeline_mode<synchronous>, transform_indices = @transform_5, window_bounds = array<i64: 4, 64>}, {pipeline_mode = #tpu.pipeline_mode<synchronous>, transform_indices = @transform_6, window_bounds = array<i64: 64, 512>}, {pipeline_mode = #tpu.pipeline_mode<synchronous>, transform_indices = @transform_7, window_bounds = array<i64: 1, 512>}, {pipeline_mode = #tpu.pipeline_mode<synchronous>, transform_indices = @transform_8, window_bounds = array<i64: 512, 32>}, {pipeline_mode = #tpu.pipeline_mode<synchronous>, transform_indices = @transform_9, window_bounds = array<i64: 1, 32>}, {transform_indices = @transform_10, window_bounds = array<i64: 1, 4, 32>}]} {
    %c0 = arith.constant 0 : index
    %c0_0 = arith.constant 0 : index
    %c0_1 = arith.constant 0 : index
    %c0_2 = arith.constant 0 : index
    %0 = vector.load %arg1[%c0, %c0_0, %c0_1, %c0_2] : memref<1x4x64x36xbf16, #tpu.memory_space<vmem>>, vector<1x1x64x36xbf16>
    %1 = vector.shape_cast %0 : vector<1x1x64x36xbf16> to vector<64x36xbf16>
    %c0_3 = arith.constant 0 : index
    %c0_4 = arith.constant 0 : index
    %2 = vector.load %arg2[%c0_3, %c0_4] : memref<36x32xbf16, #tpu.memory_space<vmem>>, vector<36x32xbf16>
    %cst = arith.constant dense<0.000000e+00> : vector<64x32xf32>
    %3 = tpu.matmul %1, %2, %cst {dimension_numbers = #tpu.dot_dimension_numbers<[1], [0], [0], [1], [0, 0, 1, 1], [], []>} : vector<64x36xbf16>, vector<36x32xbf16>, vector<64x32xf32> -> vector<64x32xf32>
    %c0_5 = arith.constant 0 : index
    %c1 = arith.constant 1 : index
    %c0_6 = arith.constant 0 : index
    %c0_7 = arith.constant 0 : index
    %4 = vector.load %arg1[%c0_5, %c1, %c0_6, %c0_7] : memref<1x4x64x36xbf16, #tpu.memory_space<vmem>>, vector<1x1x64x36xbf16>
    %5 = vector.shape_cast %4 : vector<1x1x64x36xbf16> to vector<64x36xbf16>
    %c0_8 = arith.constant 0 : index
    %c0_9 = arith.constant 0 : index
    %6 = vector.load %arg2[%c0_8, %c0_9] : memref<36x32xbf16, #tpu.memory_space<vmem>>, vector<36x32xbf16>
    %cst_10 = arith.constant dense<0.000000e+00> : vector<64x32xf32>
    %7 = tpu.matmul %5, %6, %cst_10 {dimension_numbers = #tpu.dot_dimension_numbers<[1], [0], [0], [1], [0, 0, 1, 1], [], []>} : vector<64x36xbf16>, vector<36x32xbf16>, vector<64x32xf32> -> vector<64x32xf32>
    %8 = arith.maximumf %3, %7 : vector<64x32xf32>
    %c0_11 = arith.constant 0 : index
    %c2 = arith.constant 2 : index
    %c0_12 = arith.constant 0 : index
    %c0_13 = arith.constant 0 : index
    %9 = vector.load %arg1[%c0_11, %c2, %c0_12, %c0_13] : memref<1x4x64x36xbf16, #tpu.memory_space<vmem>>, vector<1x1x64x36xbf16>
    %10 = vector.shape_cast %9 : vector<1x1x64x36xbf16> to vector<64x36xbf16>
    %c0_14 = arith.constant 0 : index
    %c0_15 = arith.constant 0 : index
    %11 = vector.load %arg2[%c0_14, %c0_15] : memref<36x32xbf16, #tpu.memory_space<vmem>>, vector<36x32xbf16>
    %cst_16 = arith.constant dense<0.000000e+00> : vector<64x32xf32>
    %12 = tpu.matmul %10, %11, %cst_16 {dimension_numbers = #tpu.dot_dimension_numbers<[1], [0], [0], [1], [0, 0, 1, 1], [], []>} : vector<64x36xbf16>, vector<36x32xbf16>, vector<64x32xf32> -> vector<64x32xf32>
    %13 = arith.maximumf %8, %12 : vector<64x32xf32>
    %c0_17 = arith.constant 0 : index
    %c3 = arith.constant 3 : index
    %c0_18 = arith.constant 0 : index
    %c0_19 = arith.constant 0 : index
    %14 = vector.load %arg1[%c0_17, %c3, %c0_18, %c0_19] : memref<1x4x64x36xbf16, #tpu.memory_space<vmem>>, vector<1x1x64x36xbf16>
    %15 = vector.shape_cast %14 : vector<1x1x64x36xbf16> to vector<64x36xbf16>
    %c0_20 = arith.constant 0 : index
    %c0_21 = arith.constant 0 : index
    %16 = vector.load %arg2[%c0_20, %c0_21] : memref<36x32xbf16, #tpu.memory_space<vmem>>, vector<36x32xbf16>
    %cst_22 = arith.constant dense<0.000000e+00> : vector<64x32xf32>
    %17 = tpu.matmul %15, %16, %cst_22 {dimension_numbers = #tpu.dot_dimension_numbers<[1], [0], [0], [1], [0, 0, 1, 1], [], []>} : vector<64x36xbf16>, vector<36x32xbf16>, vector<64x32xf32> -> vector<64x32xf32>
    %18 = arith.maximumf %13, %17 : vector<64x32xf32>
    %c0_23 = arith.constant 0 : index
    %c0_24 = arith.constant 0 : index
    %19 = vector.load %arg3[%c0_23, %c0_24] : memref<1x32xf32, #tpu.memory_space<vmem>>, vector<1x32xf32>
    %20 = vector.broadcast %19 : vector<1x32xf32> to vector<64x32xf32>
    %21 = arith.addf %18, %20 : vector<64x32xf32>
    %cst_25 = arith.constant 0.000000e+00 : f32
    %22 = vector.broadcast %cst_25 : f32 to vector<64x32xf32>
    %23 = arith.maximumf %21, %22 : vector<64x32xf32>
    %24 = arith.truncf %23 : vector<64x32xf32> to vector<64x32xbf16>
    %cst_26 = arith.constant 0.000000e+00 : bf16
    %25 = vector.broadcast %cst_26 : bf16 to vector<16x32xbf16>
    %c0_27 = arith.constant 0 : index
    %c0_28 = arith.constant 0 : index
    %26 = vector.load %arg12[%c0_27, %c0_28] : memref<96x32xbf16, #tpu.memory_space<vmem>>, vector<16x32xbf16>
    tpu.vector_store %arg12[%c0_27, %c0_28], %25 {strides = array<i32>} : memref<96x32xbf16, #tpu.memory_space<vmem>>, vector<16x32xbf16>,
    %c16 = arith.constant 16 : index
    %c0_29 = arith.constant 0 : index
    %27 = vector.load %arg12[%c16, %c0_29] : memref<96x32xbf16, #tpu.memory_space<vmem>>, vector<64x32xbf16>
    tpu.vector_store %arg12[%c16, %c0_29], %24 {strides = array<i32>} : memref<96x32xbf16, #tpu.memory_space<vmem>>, vector<64x32xbf16>,
    %c80 = arith.constant 80 : index
    %c0_30 = arith.constant 0 : index
    %28 = vector.load %arg12[%c80, %c0_30] : memref<96x32xbf16, #tpu.memory_space<vmem>>, vector<16x32xbf16>
    tpu.vector_store %arg12[%c80, %c0_30], %25 {strides = array<i32>} : memref<96x32xbf16, #tpu.memory_space<vmem>>, vector<16x32xbf16>,
    %29 = tpu.iota {dimensions = array<i32: 0>} : vector<64x1xi32>
    %c8_i32 = arith.constant 8 : i32
    %c0_i32 = arith.constant 0 : i32
    %30 = arith.cmpi eq, %c8_i32, %c0_i32 : i32
    %c1_i32 = arith.constant 1 : i32
    %31 = arith.select %30, %c1_i32, %c8_i32 : i32
    %32 = vector.broadcast %31 : i32 to vector<64x1xi32>
    %33 = arith.remsi %29, %32 : vector<64x1xi32>
    %c0_i32_31 = arith.constant 0 : i32
    %34 = vector.broadcast %c0_i32_31 : i32 to vector<64x1xi32>
    %35 = arith.cmpi ne, %33, %34 : vector<64x1xi32>
    %c0_i32_32 = arith.constant 0 : i32
    %36 = vector.broadcast %c0_i32_32 : i32 to vector<64x1xi32>
    %37 = arith.cmpi slt, %33, %36 : vector<64x1xi32>
    %c0_i32_33 = arith.constant 0 : i32
    %38 = arith.cmpi slt, %31, %c0_i32_33 : i32
    %39 = vector.broadcast %38 : i1 to vector<64x1xi1>
    %40 = vector.broadcast %39 : vector<64x1xi1> to vector<64x1xi1>
    %41 = arith.xori %37, %40 : vector<64x1xi1>
    %42 = arith.andi %41, %35 : vector<64x1xi1>
    %43 = vector.broadcast %31 : i32 to vector<64x1xi32>
    %44 = arith.addi %33, %43 : vector<64x1xi32>
    %45 = arith.select %42, %44, %33 : vector<64x1xi1>, vector<64x1xi32>
    %c0_i32_34 = arith.constant 0 : i32
    %46 = vector.broadcast %c0_i32_34 : i32 to vector<64x1xi32>
    %47 = arith.cmpi ne, %45, %46 : vector<64x1xi32>
    %c7_i32 = arith.constant 7 : i32
    %48 = vector.broadcast %c7_i32 : i32 to vector<64x1xi32>
    %49 = arith.cmpi ne, %45, %48 : vector<64x1xi32>
    %c7 = arith.constant 7 : index
    %c0_35 = arith.constant 0 : index
    %50 = vector.load %arg12[%c7, %c0_35] : memref<96x32xbf16, #tpu.memory_space<vmem>>, vector<64x32xbf16>
    %cst_36 = arith.constant 0.000000e+00 : bf16
    %51 = vector.broadcast %cst_36 : bf16 to vector<64x32xbf16>
    %52 = vector.shape_cast %47 : vector<64x1xi1> to vector<64x1xi1>
    %53 = vector.broadcast %52 : vector<64x1xi1> to vector<64x32xi1>
    %54 = arith.select %53, %50, %51 : vector<64x32xi1>, vector<64x32xbf16>
    %c8 = arith.constant 8 : index
    %c0_37 = arith.constant 0 : index
    %55 = vector.load %arg12[%c8, %c0_37] : memref<96x32xbf16, #tpu.memory_space<vmem>>, vector<64x32xbf16>
    %c9 = arith.constant 9 : index
    %c0_38 = arith.constant 0 : index
    %56 = vector.load %arg12[%c9, %c0_38] : memref<96x32xbf16, #tpu.memory_space<vmem>>, vector<64x32xbf16>
    %cst_39 = arith.constant 0.000000e+00 : bf16
    %57 = vector.broadcast %cst_39 : bf16 to vector<64x32xbf16>
    %58 = vector.shape_cast %49 : vector<64x1xi1> to vector<64x1xi1>
    %59 = vector.broadcast %58 : vector<64x1xi1> to vector<64x32xi1>
    %60 = arith.select %59, %56, %57 : vector<64x32xi1>, vector<64x32xbf16>
    %c15 = arith.constant 15 : index
    %c0_40 = arith.constant 0 : index
    %61 = vector.load %arg12[%c15, %c0_40] : memref<96x32xbf16, #tpu.memory_space<vmem>>, vector<64x32xbf16>
    %cst_41 = arith.constant 0.000000e+00 : bf16
    %62 = vector.broadcast %cst_41 : bf16 to vector<64x32xbf16>
    %63 = vector.shape_cast %47 : vector<64x1xi1> to vector<64x1xi1>
    %64 = vector.broadcast %63 : vector<64x1xi1> to vector<64x32xi1>
    %65 = arith.select %64, %61, %62 : vector<64x32xi1>, vector<64x32xbf16>
    %c16_42 = arith.constant 16 : index
    %c0_43 = arith.constant 0 : index
    %66 = vector.load %arg12[%c16_42, %c0_43] : memref<96x32xbf16, #tpu.memory_space<vmem>>, vector<64x32xbf16>
    %c17 = arith.constant 17 : index
    %c0_44 = arith.constant 0 : index
    %67 = vector.load %arg12[%c17, %c0_44] : memref<96x32xbf16, #tpu.memory_space<vmem>>, vector<64x32xbf16>
    %cst_45 = arith.constant 0.000000e+00 : bf16
    %68 = vector.broadcast %cst_45 : bf16 to vector<64x32xbf16>
    %69 = vector.shape_cast %49 : vector<64x1xi1> to vector<64x1xi1>
    %70 = vector.broadcast %69 : vector<64x1xi1> to vector<64x32xi1>
    %71 = arith.select %70, %67, %68 : vector<64x32xi1>, vector<64x32xbf16>
    %c23 = arith.constant 23 : index
    %c0_46 = arith.constant 0 : index
    %72 = vector.load %arg12[%c23, %c0_46] : memref<96x32xbf16, #tpu.memory_space<vmem>>, vector<64x32xbf16>
    %cst_47 = arith.constant 0.000000e+00 : bf16
    %73 = vector.broadcast %cst_47 : bf16 to vector<64x32xbf16>
    %74 = vector.shape_cast %47 : vector<64x1xi1> to vector<64x1xi1>
    %75 = vector.broadcast %74 : vector<64x1xi1> to vector<64x32xi1>
    %76 = arith.select %75, %72, %73 : vector<64x32xi1>, vector<64x32xbf16>
    %c24 = arith.constant 24 : index
    %c0_48 = arith.constant 0 : index
    %77 = vector.load %arg12[%c24, %c0_48] : memref<96x32xbf16, #tpu.memory_space<vmem>>, vector<64x32xbf16>
    %c25 = arith.constant 25 : index
    %c0_49 = arith.constant 0 : index
    %78 = vector.load %arg12[%c25, %c0_49] : memref<96x32xbf16, #tpu.memory_space<vmem>>, vector<64x32xbf16>
    %cst_50 = arith.constant 0.000000e+00 : bf16
    %79 = vector.broadcast %cst_50 : bf16 to vector<64x32xbf16>
    %80 = vector.shape_cast %49 : vector<64x1xi1> to vector<64x1xi1>
    %81 = vector.broadcast %80 : vector<64x1xi1> to vector<64x32xi1>
    %82 = arith.select %81, %78, %79 : vector<64x32xi1>, vector<64x32xbf16>
    %83 = tpu.concatenate %54, %55, %60, %65, %66, %71, %76, %77, %82 in 1 : vector<64x32xbf16>, vector<64x32xbf16>, vector<64x32xbf16>, vector<64x32xbf16>, vector<64x32xbf16>, vector<64x32xbf16>, vector<64x32xbf16>, vector<64x32xbf16>, vector<64x32xbf16> -> vector<64x288xbf16>
    %c0_51 = arith.constant 0 : index
    %c0_52 = arith.constant 0 : index
    %84 = vector.load %arg4[%c0_51, %c0_52] : memref<288x64xbf16, #tpu.memory_space<vmem>>, vector<288x64xbf16>
    %cst_53 = arith.constant dense<0.000000e+00> : vector<64x64xf32>
    %85 = tpu.matmul %83, %84, %cst_53 {dimension_numbers = #tpu.dot_dimension_numbers<[1], [0], [0], [1], [0, 0, 1, 1], [], []>} : vector<64x288xbf16>, vector<288x64xbf16>, vector<64x64xf32> -> vector<64x64xf32>
    %c0_54 = arith.constant 0 : index
    %c0_55 = arith.constant 0 : index
    %86 = vector.load %arg5[%c0_54, %c0_55] : memref<1x64xf32, #tpu.memory_space<vmem>>, vector<1x64xf32>
    %87 = vector.broadcast %86 : vector<1x64xf32> to vector<64x64xf32>
    %88 = arith.addf %85, %87 : vector<64x64xf32>
    %cst_56 = arith.constant 0.000000e+00 : f32
    %89 = vector.broadcast %cst_56 : f32 to vector<64x64xf32>
    %90 = arith.maximumf %88, %89 : vector<64x64xf32>
    %91 = arith.truncf %90 : vector<64x64xf32> to vector<64x64xbf16>
    %c0_57 = arith.constant 0 : index
    %c0_58 = arith.constant 0 : index
    %92 = vector.load %arg6[%c0_57, %c0_58] : memref<4x64xbf16, #tpu.memory_space<vmem>>, vector<4x64xbf16>
    %cst_59 = arith.constant dense<0.000000e+00> : vector<4x64xf32>
    %93 = tpu.matmul %92, %91, %cst_59 {dimension_numbers = #tpu.dot_dimension_numbers<[1], [0], [0], [1], [0, 0, 1, 1], [], []>} : vector<4x64xbf16>, vector<64x64xbf16>, vector<4x64xf32> -> vector<4x64xf32>
    %94 = arith.truncf %93 : vector<4x64xf32> to vector<4x64xbf16>
    %c0_60 = arith.constant 0 : index
    %c0_61 = arith.constant 0 : index
    %95 = vector.load %arg7[%c0_60, %c0_61] : memref<64x512xbf16, #tpu.memory_space<vmem>>, vector<64x512xbf16>
    %cst_62 = arith.constant dense<0.000000e+00> : vector<4x512xf32>
    %96 = tpu.matmul %94, %95, %cst_62 {dimension_numbers = #tpu.dot_dimension_numbers<[1], [0], [0], [1], [0, 0, 1, 1], [], []>} : vector<4x64xbf16>, vector<64x512xbf16>, vector<4x512xf32> -> vector<4x512xf32>
    %c0_63 = arith.constant 0 : index
    %c0_64 = arith.constant 0 : index
    %97 = vector.load %arg8[%c0_63, %c0_64] : memref<1x512xf32, #tpu.memory_space<vmem>>, vector<1x512xf32>
    %98 = vector.broadcast %97 : vector<1x512xf32> to vector<4x512xf32>
    %99 = arith.addf %96, %98 : vector<4x512xf32>
    %cst_65 = arith.constant 0.000000e+00 : f32
    %100 = vector.broadcast %cst_65 : f32 to vector<4x512xf32>
    %101 = arith.maximumf %99, %100 : vector<4x512xf32>
    %102 = arith.truncf %101 : vector<4x512xf32> to vector<4x512xbf16>
    %c0_66 = arith.constant 0 : index
    %c0_67 = arith.constant 0 : index
    %103 = vector.load %arg9[%c0_66, %c0_67] : memref<512x32xbf16, #tpu.memory_space<vmem>>, vector<512x32xbf16>
    %cst_68 = arith.constant dense<0.000000e+00> : vector<4x32xf32>
    %104 = tpu.matmul %102, %103, %cst_68 {dimension_numbers = #tpu.dot_dimension_numbers<[1], [0], [0], [1], [0, 0, 1, 1], [], []>} : vector<4x512xbf16>, vector<512x32xbf16>, vector<4x32xf32> -> vector<4x32xf32>
    %c0_69 = arith.constant 0 : index
    %c0_70 = arith.constant 0 : index
    %105 = vector.load %arg10[%c0_69, %c0_70] : memref<1x32xf32, #tpu.memory_space<vmem>>, vector<1x32xf32>
    %106 = vector.broadcast %105 : vector<1x32xf32> to vector<4x32xf32>
    %107 = arith.addf %104, %106 : vector<4x32xf32>
    %c0_71 = arith.constant 0 : index
    %c0_72 = arith.constant 0 : index
    %c0_73 = arith.constant 0 : index
    %108 = vector.load %arg11[%c0_71, %c0_72, %c0_73] : memref<1x4x32xf32, #tpu.memory_space<vmem>>, vector<1x4x32xf32>
    %109 = vector.shape_cast %108 : vector<1x4x32xf32> to vector<4x32xf32>
    %110 = vector.shape_cast %107 : vector<4x32xf32> to vector<1x4x32xf32>
    tpu.vector_store %arg11[%c0_71, %c0_72, %c0_73], %110 {strides = array<i32>} : memref<1x4x32xf32, #tpu.memory_space<vmem>>, vector<1x4x32xf32>,
    return
  }
  func.func @transform_0(%arg0: i32) -> (i32, i32, i32, i32) {
    %c0_i32 = arith.constant 0 : i32
    %c0_i32_0 = arith.constant 0 : i32
    %c0_i32_1 = arith.constant 0 : i32
    %c0_i32_2 = arith.constant 0 : i32
    return %arg0, %c0_i32, %c0_i32_0, %c0_i32_1 : i32, i32, i32, i32
  }
  func.func @transform_1(%arg0: i32) -> (i32, i32) {
    %c0_i32 = arith.constant 0 : i32
    %c0_i32_0 = arith.constant 0 : i32
    %c0_i32_1 = arith.constant 0 : i32
    return %c0_i32, %c0_i32_0 : i32, i32
  }
  func.func @transform_2(%arg0: i32) -> (i32, i32) {
    %c0_i32 = arith.constant 0 : i32
    %c0_i32_0 = arith.constant 0 : i32
    %c0_i32_1 = arith.constant 0 : i32
    return %c0_i32, %c0_i32_0 : i32, i32
  }
  func.func @transform_3(%arg0: i32) -> (i32, i32) {
    %c0_i32 = arith.constant 0 : i32
    %c0_i32_0 = arith.constant 0 : i32
    %c0_i32_1 = arith.constant 0 : i32
    return %c0_i32, %c0_i32_0 : i32, i32
  }
  func.func @transform_4(%arg0: i32) -> (i32, i32) {
    %c0_i32 = arith.constant 0 : i32
    %c0_i32_0 = arith.constant 0 : i32
    %c0_i32_1 = arith.constant 0 : i32
    return %c0_i32, %c0_i32_0 : i32, i32
  }
  func.func @transform_5(%arg0: i32) -> (i32, i32) {
    %c0_i32 = arith.constant 0 : i32
    %c0_i32_0 = arith.constant 0 : i32
    %c0_i32_1 = arith.constant 0 : i32
    return %c0_i32, %c0_i32_0 : i32, i32
  }
  func.func @transform_6(%arg0: i32) -> (i32, i32) {
    %c0_i32 = arith.constant 0 : i32
    %c0_i32_0 = arith.constant 0 : i32
    %c0_i32_1 = arith.constant 0 : i32
    return %c0_i32, %c0_i32_0 : i32, i32
  }
  func.func @transform_7(%arg0: i32) -> (i32, i32) {
    %c0_i32 = arith.constant 0 : i32
    %c0_i32_0 = arith.constant 0 : i32
    %c0_i32_1 = arith.constant 0 : i32
    return %c0_i32, %c0_i32_0 : i32, i32
  }
  func.func @transform_8(%arg0: i32) -> (i32, i32) {
    %c0_i32 = arith.constant 0 : i32
    %c0_i32_0 = arith.constant 0 : i32
    %c0_i32_1 = arith.constant 0 : i32
    return %c0_i32, %c0_i32_0 : i32, i32
  }
  func.func @transform_9(%arg0: i32) -> (i32, i32) {
    %c0_i32 = arith.constant 0 : i32
    %c0_i32_0 = arith.constant 0 : i32
    %c0_i32_1 = arith.constant 0 : i32
    return %c0_i32, %c0_i32_0 : i32, i32
  }
  func.func @transform_10(%arg0: i32) -> (i32, i32, i32) {
    %c0_i32 = arith.constant 0 : i32
    %c0_i32_0 = arith.constant 0 : i32
    %c0_i32_1 = arith.constant 0 : i32
    return %arg0, %c0_i32, %c0_i32_0 : i32, i32, i32
  }
}

</mosaic_0001>

<bundles_post_ra>
// kernel: density_estimation_forward.1
= control target key start
LH: loop header
LB: loop body
LE: loop exit
PB: predicated region body
PF: predicated region fallthrough
CT: control target
= control target key end

     0   :  { %15 = vsyncpa [#allocation4], 0  ;;  %s4686_s0 = inlined_call_operand.vmem [shape: bf16[2,4,64,36], index: 0, kind: input, shape index: {}]   ;;  %s4687_s1 = inlined_call_operand.vmem [shape: bf16[36,32], index: 1, kind: input, shape index: {}]   ;;  %s4688_s2 = inlined_call_operand.vmem [shape: f32[1,32], index: 2, kind: input, shape index: {}]   ;;  %s4689_s3 = inlined_call_operand.vmem [shape: bf16[288,64], index: 3, kind: input, shape index: {}]   ;;  %s4690_s4 = inlined_call_operand.vmem [shape: f32[1,64], index: 4, kind: input, shape index: {}]   ;;  %s4691_s5 = inlined_call_operand.vmem [shape: bf16[4,64], index: 5, kind: input, shape index: {}]   ;;  %s4692_s6 = inlined_call_operand.vmem [shape: bf16[64,512], index: 6, kind: input, shape index: {}]   ;;  %s4693_s7 = inlined_call_operand.vmem [shape: f32[1,512], index: 7, kind: input, shape index: {}]   ;;  %s4694_s8 = inlined_call_operand.vmem [shape: bf16[512,32], index: 8, kind: input, shape index: {}]   ;;  %s4695_s9 = inlined_call_operand.vmem [shape: f32[1,32], index: 9, kind: input, shape index: {}]   ;;  %s4696_s10 = inlined_call_operand.hbm [shape: f32[2,4,32], index: 10, kind: output, shape index: {}]  }
   0x1   :  { %17 = vsyncpa [#allocation4 + $0x1], 0  ;;  %s3293_s13 = smov 0   ;;  %s3295_s14 = smov 0  }
   0x2   :  { %s3297_s15 = smov 0   ;;  %s3299_s16 = smov 0  }
   0x3 LB: > { %s3314_s17 = sadd.s32 4294967295, %s3232_s16   ;;  %s2639_s18 = sadd.s32 4294967294, %s3232_s16   ;;  %s3232_s16 = sphi %s3299_s16, %s4837_s16   ;;  %s3228_s15 = sphi %s3297_s15, %s4836_s15   ;;  %s3224_s14 = sphi %s3295_s14, %s4835_s14   ;;  %s3220_s13 = sphi %s3293_s13, %s4834_s13  }
   0x4   : > { %s3318_s19 = sadd.s32 1, %s3232_s16   ;;  %s245_s20 = sadd.s32 1, %s3228_s15 }
   0x5   : > { %s242_s21 = ssub.s32 %s3232_s16, %s3318_s19  ;;  %p255_p0 = scmp.ne.s32.totalorder %s3228_s15, %s3224_s14 }
   0x6   : > { %p243_p1 = scmp.eq.s32.totalorder %s242_s21, 0  ;;  %p256_p2 = scmp.eq.s32.totalorder %s3314_s17, 1 }
   0x7   : > { %p261_p3 = scmp.ne.s32.totalorder %s3224_s14, %s3220_s13  ;;  %p262_p4 = scmp.eq.s32.totalorder %s2639_s18, 1 }
   0x8   : > { %s3329_s22 = scalar_select %p243_p1, %s3228_s15, %s245_s20  }
   0x9   : > { %p3331_p5 = por %p256_p2, %p255_p0  ;;  %p3335_p6 = por %p262_p4, %p261_p3 }
   0xa   : > { %p2642_p7 = scmp.ge.s32.totalorder %s3232_s16, 1  ;;  %p315_p8 = scmp.lt.s32.totalorder %s3232_s16, 3 }
   0xc   : > { %p316_p9 = pnand %p2642_p7, %p315_p8 }
   0xd   : > { %p353_p10 = scmp.lt.s32.totalorder (!%p316_p9), %s3314_s17, 1  ;;  %s3236_s28 = smov (!%p316_p9), 64  }
   0xe   : > { %319 = sbr.rel (%p316_p9) target bundleno = 1015 (0x3f7), region = 60  ;;  %s3237_s29 = smov (!%p316_p9), 32  }
  0x13   : > { %v373_v0 = vld [vmem:[%s4687_s1 + $0x10] sm:$0x3]  ;;  %vm422_vm0 = vcmask 1041408   ;;  %s354_s27 = scalar_select %p353_p10, %s3314_s17, 1  ;;  %v3041_v4 = vld [vmem:[%s4687_s1 + $0x8] sm:$0xff]  ;;  %v3040_v5 = vld [vmem:[%s4687_s1] sm:$0xff]  ;;  %v730_v22 = vlaneseq }
  0x14   : > { %v403_v1 = vunpack.c.l.b16 %v373_v0  ;;  %vm409_vm1 = vcmask 293888   ;;  %v3234_v27 = vmov 0   ;;  %vm4698_vm9 = vcmask 257024  }
  0x15   : > { %s3035_s30 = sshll.u32 %s354_s27, 7  ;;  %v3389_v23 = vshrl.u32 %v730_v22, 7  ;;  %718 = vst.msk [vmem:[#allocation2] sm:$0xf] %vm4698_vm9, %v3234_v27  ;;  %vm4697_vm12 = vsmask.f32 3328  ;;  %v3423_v52 = vunpack.c.l.b16 %v3234_v27  ;;  %v3426_v55 = vunpack.c.h.b16 %v3234_v27 }
  0x16   : > { %v406_v2 = vpack.c.b16 %v403_v1, %v403_v1  ;;  %s3355_s21 = scalar_lea.vmem %s4686_s0, %s3035_s30  ;;  %719 = vst.msk [vmem:[#allocation2 + $0x4] sm:$0xf] %vm4698_vm9, %v3234_v27  ;;  %vm893_vm13 = vsmask.f32 7440  ;;  %s3235_s27 = smov 96  }
  0x17   : > { %v3039_v6 = vld [vmem:[%s3355_s21 + $0x18] sm:$0xff]  ;;  %v3046_v7 = vld [vmem:[%s3355_s21 + $0x40] sm:$0xff]  ;;  %v3047_v11 = vld [vmem:[%s3355_s21 + $0x48] sm:$0xff]  ;;  %v732_v24 = vadd.s32 8, %v3389_v23  ;;  %v743_v25 = vand.u32 7, %v3389_v23  ;;  %v733_v33 = vadd.s32 16, %v3389_v23 }
  0x18   : > { %v424_v3 = vsel %vm422_vm0, %v406_v2, 0  ;;  %v3050_v8 = vld [vmem:[%s3355_s21 + $0x60] sm:$0xff]  ;;  %v3051_v12 = vld [vmem:[%s3355_s21 + $0x68] sm:$0xff]  ;;  %v3048_v15 = vld [vmem:[%s3355_s21 + $0x50] sm:$0xff]  ;;  %728 = vst.msk [vmem:[#allocation2 + $0x28] sm:$0xf] %vm4698_vm9, %v3234_v27 }
  0x19   : > { %3120 = vmatpush.bf16.msra.mxu1 %v424_v3  ;;  %579 = vmatpush.bf16.msra.mxu2 %v424_v3  ;;  %v3036_v9 = vld [vmem:[%s3355_s21] sm:$0xff]  ;;  %v3037_v13 = vld [vmem:[%s3355_s21 + $0x8] sm:$0xff]  ;;  %v3052_v16 = vld [vmem:[%s3355_s21 + $0x70] sm:$0xff]  ;;  %v750_v26 = vand.u32 7, %v732_v24  ;;  %vm835_vm2 = vcmp.ne.s32.totalorder %v743_v25, 0  ;;  %vm843_vm4 = vcmp.ne.s32.totalorder %v743_v25, 7 }
  0x1a   : > { %657 = vmatpush.bf16.msra.mxu3 %v424_v3  ;;  %431 = vmatpush.bf16.msra.mxu0 %v424_v3  ;;  %v3042_v10 = vld [vmem:[%s3355_s21 + $0x20] sm:$0xff]  ;;  %v3043_v14 = vld [vmem:[%s3355_s21 + $0x28] sm:$0xff]  ;;  %v3038_v17 = vld [vmem:[%s3355_s21 + $0x10] sm:$0xff]  ;;  %v757_v38 = vand.u32 7, %v733_v33  ;;  %729 = vst.msk [vmem:[#allocation2 + $0x2c] sm:$0xf] %vm4698_vm9, %v3234_v27 }
  0x1b   : > { %v3044_v18 = vld [vmem:[%s3355_s21 + $0x30] sm:$0xff]  ;;  %v3049_v19 = vld [vmem:[%s3355_s21 + $0x58] sm:$0xff]  ;;  %vm876_vm3 = vmpackc.low %vm835_vm2, %vm835_vm2  ;;  %vm844_vm5 = vcmp.ne.s32.totalorder %v750_v26, 7  ;;  %vm3394_vm6 = vcmp.ne.s32.totalorder %v750_v26, 0  ;;  %v734_v50 = vadd.s32 24, %v3389_v23 }
  0x1c   : > { %v3053_v20 = vld [vmem:[%s3355_s21 + $0x78] sm:$0xff]  ;;  %v884_v28 = vsel %vm876_vm3, 65537, %v3234_v27  ;;  %vm1063_vm7 = vmpackc.low %vm843_vm4, %vm843_vm4  ;;  %vm3415_vm11 = vcmp.ne.s32.totalorder %v757_v38, 0  ;;  %vm3428_vm14 = vcmp.ne.s32.totalorder %v757_v38, 7  ;;  %vm1080_vm2 = vsmask.f32 4368 }
  0x1d   : > { %3121 = vmatpush.bf16.msra.mxu1 %v3041_v4  ;;  %580 = vmatpush.bf16.msra.mxu2 %v3041_v4  ;;  %v3045_v21 = vld [vmem:[%s3355_s21 + $0x38] sm:$0xff]  ;;  %v896_v30 = vshll.u32 %v884_v28, 16  ;;  %v899_v31 = vshrl.u32 %v884_v28, 16  ;;  %vm1064_vm8 = vmpackc.low %vm844_vm5, %vm844_vm5  ;;  %v1071_v32 = vsel %vm1063_vm7, 65537, %v3234_v27  ;;  %v764_v63 = vand.u32 7, %v734_v50  ;;  %s350_s21 = sand.u32 1, %s3224_s14  }
  0x1e   : > { %658 = vmatpush.bf16.msra.mxu3 %v3041_v4  ;;  %432 = vmatpush.bf16.msra.mxu0 %v3041_v4  ;;  %vm877_vm10 = vmpackc.low %vm3394_vm6, %vm3394_vm6  ;;  %v1072_v34 = vsel %vm1064_vm8, 65537, %v3234_v27  ;;  %v1083_v35 = vshrl.u32 %v1071_v32, 16  ;;  %v1086_v42 = vshll.u32 %v1071_v32, 16  ;;  %v3491_v22 = vld [vmem:[#allocation2 + $0x4] sm:$0xf]  ;;  %s2565_s25 = scalar_lea.sflag [#allocation4], %s350_s21 }
  0x1f   : > { %v898_v36 = vrot.slane %v896_v30, 5  ;;  %v901_v37 = vrot.slane %v899_v31, 4  ;;  %v885_v39 = vsel %vm877_vm10, 65537, %v3234_v27  ;;  %v1091_v40 = vshrl.u32 %v1072_v34, 16  ;;  %vm878_vm15 = vmpackc.low %vm3415_vm11, %vm3415_vm11 }
  0x20   : > { %v1085_v41 = vrot.slane %v1083_v35, 7  ;;  %v905_v45 = vshll.u32 %v885_v39, 16  ;;  %v909_v46 = vshrl.u32 %v885_v39, 16  ;;  %v1094_v49 = vshll.u32 %v1072_v34, 16  ;;  %vm3438_vm0 = vmor %vm4697_vm12, %vm893_vm13 }
  0x21   : > { %3122 = vmatpush.bf16.msra.mxu1 %v3040_v5  ;;  %581 = vmatpush.bf16.msra.mxu2 %v3040_v5  ;;  %v902_v44 = vor.u32 %v901_v37, %v898_v36  ;;  %v3419_v48 = vrot.slane %v1091_v40, 7  ;;  %v974_v51 = vunpack.c.l.b16 %v898_v36  ;;  %v975_v54 = vunpack.c.h.b16 %v898_v36  ;;  %vm1065_vm4 = vmpackc.low %vm3428_vm14, %vm3428_vm14 }
  0x22   : > { %659 = vmatpush.bf16.msra.mxu3 %v3040_v5  ;;  %433 = vmatpush.bf16.msra.mxu0 %v3040_v5  ;;  %v1088_v53 = vor.u32 %v1086_v42, %v1085_v41  ;;  %v907_v58 = vrot.slane %v905_v45, 5  ;;  %v911_v59 = vrot.slane %v909_v46, 4  ;;  %v1089_v62 = vrot.slane %v1085_v41, 4 }
  0x23   : > { %v903_v57 = vrot.slane %v902_v44, 4  ;;  %vm3443_vm3 = vcmp.ne.s32.totalorder %v974_v51, %v3423_v52  ;;  %v1096_v2 = vor.u32 %v1094_v49, %v3419_v48  ;;  %vm979_vm5 = vcmp.ne.s32.totalorder %v975_v54, %v3426_v55 }
  0x24   : > { %2673 = vmatmul.msk.bf16.vlgmr.msra.gmra.mxu1 %vm409_vm1, %v3039_v6  ;;  %2726 = vmatmul.msk.bf16.vlgmr.msra.gmra.mxu2 %vm409_vm1, %v3046_v7  ;;  %v1154_v7 = vunpack.c.h.b16 %v1088_v53  ;;  %vm3457_vm6 = vcmp.ne.s32.totalorder %v764_v63, 0  ;;  %vm3467_vm8 = vcmp.ne.s32.totalorder %v764_v63, 7  ;;  %vm3480_vm11 = vmpackc.low %vm979_vm5, %vm3443_vm3  ;;  %v1298_v40 = vunpack.c.l.b16 %v3491_v22 }
  0x25   : > { %501 = vmatpush.bf16.msrb.mxu1 %v424_v3  ;;  %2754 = vmatmul.msk.bf16.vlgmr.msra.gmra.mxu3 %vm409_vm1, %v3050_v8  ;;  %v1153_v3 = vunpack.c.l.b16 %v1088_v53  ;;  %vm879_vm10 = vmpackc.low %vm3457_vm6, %vm3457_vm6  ;;  %v736_v53 = vadd.s32 40, %v3389_v23 }
  0x26   : > { %2670 = vmatmul.msk.bf16.vlgmr.msra.gmra.mxu0 %vm409_vm1, %v3036_v9  ;;  %vm1158_vm14 = vcmp.ne.s32.totalorder %v1154_v7, %v3426_v55  ;;  %v887_v24 = vsel %vm879_vm10, 65537, %v3234_v27 }
  0x27   : > { %vm1157_vm13 = vcmp.ne.s32.totalorder %v1153_v3, %v3423_v52  ;;  %v929_v31 = vshrl.u32 %v887_v24, 16  ;;  %v925_v42 = vshll.u32 %v887_v24, 16 }
  0x29   : > { %502 = vmatpush.bf16.msrb.mxu1 %v3041_v4  ;;  %v886_v4 = vsel %vm878_vm15, 65537, %v3234_v27  ;;  %vm1066_vm15 = vmpackc.low %vm3467_vm8, %vm3467_vm8  ;;  %v931_v56 = vrot.slane %v929_v31, 4  ;;  %v927_v1 = vrot.slane %v925_v42, 5 }
  0x2a   : > { %v919_v9 = vshrl.u32 %v886_v4, 16  ;;  %v1074_v35 = vsel %vm1066_vm15, 65537, %v3234_v27 }
  0x2b   : > { %v1109_v51 = vshrl.u32 %v1074_v35, 16 }
  0x2d   : > { %503 = vmatpush.bf16.msrb.mxu1 %v3040_v5 }
  0x34   : > { %2698 = vmatmul.msk.bf16.vlgmr.msrb.gmra.mxu1 %vm409_vm1, %v3042_v10  ;;  %2727 = vmatmul.msk.bf16.gmra.mxu2 %vm409_vm1, %v3047_v11  ;;  %v1112_v11 = vshll.u32 %v1074_v35, 16 }
  0x35   : > { %2755 = vmatmul.msk.bf16.gmra.mxu3 %vm409_vm1, %v3051_v12  ;;  %v908_v12 = vsel %vm3438_vm0, %v903_v57, %v907_v58 }
  0x36   : > { %2671 = vmatmul.msk.bf16.gmra.mxu0 %vm409_vm1, %v3037_v13  ;;  %v915_v13 = vshll.u32 %v886_v4, 16  ;;  %v982_v28 = vunpack.c.h.b16 %v908_v12 }
  0x38   : > { %v917_v30 = vrot.slane %v915_v13, 5  ;;  %vm3539_vm8 = vcmp.ne.s32.totalorder %v982_v28, %v3426_v55 }
  0x44   : > { %2699 = vmatmul.msk.bf16.gmra.mxu1 %vm409_vm1, %v3043_v14  ;;  %2728 = vmatmul.msk.bf16.gmra.mxu2 %vm409_vm1, %v3048_v15  ;;  %v1073_v14 = vsel %vm1065_vm4, 65537, %v3234_v27  ;;  %v735_v15 = vadd.s32 32, %v3389_v23 }
  0x45   : > { %2756 = vmatmul.msk.bf16.gmra.mxu3 %vm409_vm1, %v3052_v16  ;;  %v912_v16 = vor.u32 %v911_v59, %v907_v58  ;;  %v1100_v25 = vshrl.u32 %v1073_v14, 16  ;;  %v1103_v49 = vshll.u32 %v1073_v14, 16  ;;  %v3521_v58 = vld [vmem:[%s4688_s2] ss:$0 sm:$0xff]  ;;  %v1098_v59 = vrot.slane %v3419_v48, 4 }
  0x46   : > { %2672 = vmatmul.msk.bf16.gmra.mxu0 %vm409_vm1, %v3038_v17  ;;  %v4720_v17 = vmov 0  ;;  %v771_v26 = vand.u32 7, %v735_v15 }
  0x47   : > { %v4721_v17 = vsel %vm3480_vm11, 4294967295, %v4720_v17  ;;  %v913_v34 = vrot.slane %v912_v16, 4  ;;  %v3511_v47 = vrot.slane %v1100_v25, 7 }
  0x48   : > { %vm847_vm4 = vcmp.ne.s32.totalorder %v771_v26, 7 }
  0x49   : > { %v3529_v63 = vsel %vm3438_vm0, %v913_v34, %v917_v30  ;;  %v1105_v3 = vor.u32 %v1103_v49, %v3511_v47  ;;  %vm1067_vm5 = vmpackc.low %vm847_vm4, %vm847_vm4  ;;  %v1107_v34 = vrot.slane %v3511_v47, 4 }
  0x4a   : > { %v988_v16 = vunpack.c.l.b16 %v3529_v63 }
  0x4c   : > { %vm3586_vm4 = vcmp.ne.s32.totalorder %v988_v16, %v3423_v52  ;;  %v4738_v16 = vmov 0 }
  0x54   : > { %2700 = vmatmul.msk.bf16.gmra.mxu1 %vm409_vm1, %v3044_v18  ;;  %2729 = vmatmul.msk.bf16.gmra.mxu2 %vm409_vm1, %v3049_v19  ;;  %v1225_v18 = vld [vmem:[#allocation2 + $0x4] sm:$0x8] }
  0x55   : > { %2757 = vmatmul.msk.bf16.gmra.mxu3 %vm409_vm1, %v3053_v20  ;;  %v921_v20 = vrot.slane %v919_v9, 4  ;;  %v1227_v29 = vsel %vm3480_vm11, %v1225_v18, 0  ;;  %v1111_v9 = vrot.slane %v1109_v51, 7 }
  0x56   : > { %v3509_v46 = vunpack.c.l.b16 %v1227_v29 }
  0x57   : > { %v922_v41 = vor.u32 %v921_v20, %v917_v30  ;;  %v1114_v35 = vor.u32 %v1112_v11, %v1111_v9  ;;  %v1116_v49 = vrot.slane %v1111_v9, 4 }
  0x64   : > { %2701 = vmatmul.msk.bf16.gmra.mxu1 %vm409_vm1, %v3045_v21  ;;  %vm1079_vm1 = vsmask.f32 256  ;;  %v981_v21 = vunpack.c.l.b16 %v908_v12  ;;  %v1075_v12 = vsel %vm1067_vm5, 65537, %v3234_v27 }
  0x65   : > { %vm3463_vm7 = vmor %vm1079_vm1, %vm1080_vm2  ;;  %vm3501_vm2 = vcmp.ne.s32.totalorder %v771_v26, 0  ;;  %v1118_v18 = vshrl.u32 %v1075_v12, 16 }
  0x66   : > { %v1097_v19 = vsel %vm3463_vm7, %v1089_v62, %v1096_v2  ;;  %vm3496_vm1 = vmpackc.low %vm1158_vm14, %vm1157_vm13  ;;  %v778_v2 = vand.u32 7, %v736_v53  ;;  %vm3534_vm6 = vcmp.ne.s32.totalorder %v981_v21, %v3423_v52  ;;  %v1121_v21 = vshll.u32 %v1075_v12, 16 }
  0x67   : > { %v1160_v33 = vunpack.c.l.b16 %v1097_v19  ;;  %v1161_v39 = vunpack.c.h.b16 %v1097_v19  ;;  %vm880_vm3 = vmpackc.low %vm3501_vm2, %vm3501_vm2  ;;  %v1216_v62 = vsel %vm3496_vm1, %v3491_v22, 0  ;;  %v3560_v29 = vrot.slane %v1118_v18, 7 }
  0x68   : > { %v888_v54 = vsel %vm880_vm3, 65537, %v3234_v27  ;;  %vm840_vm14 = vcmp.ne.s32.totalorder %v778_v2, 0  ;;  %vm848_vm2 = vcmp.ne.s32.totalorder %v778_v2, 7  ;;  %v1115_v2 = vsel %vm3463_vm7, %v1107_v34, %v1114_v35 }
  0x69   : > { %v935_v4 = vshll.u32 %v888_v54, 16  ;;  %v939_v7 = vshrl.u32 %v888_v54, 16  ;;  %vm3546_vm10 = vcmp.ne.s32.totalorder %v1160_v33, %v3423_v52  ;;  %vm3551_vm13 = vcmp.ne.s32.totalorder %v1161_v39, %v3426_v55  ;;  %vm881_vm15 = vmpackc.low %vm840_vm14, %vm840_vm14 }
  0x6a   : > { %v3563_v30 = vsel %vm881_vm15, 65537, %v3234_v27  ;;  %v1106_v33 = vsel %vm3463_vm7, %v1098_v59, %v1105_v3  ;;  %vm1068_vm3 = vmpackc.low %vm848_vm2, %vm848_vm2  ;;  %v1123_v51 = vor.u32 %v1121_v21, %v3560_v29  ;;  %v1174_v8 = vunpack.c.l.b16 %v1115_v2 }
  0x6b   : > { %v937_v24 = vrot.slane %v935_v4, 5  ;;  %v941_v25 = vrot.slane %v939_v7, 4  ;;  %v945_v53 = vshll.u32 %v3563_v30, 16  ;;  %v1167_v54 = vunpack.c.l.b16 %v1106_v33  ;;  %vm3607_vm14 = vmpackc.low %vm3539_vm8, %vm3534_vm6 }
  0x6c   : > { %v3597_v7 = vsel %vm3463_vm7, %v1116_v49, %v1123_v51  ;;  %v4739_v16 = vsel %vm3607_vm14, 4294967295, %v4738_v16  ;;  %v1125_v15 = vrot.slane %v3560_v29, 4  ;;  %vm3661_vm6 = vcmp.ne.s32.totalorder %v1174_v8, %v3423_v52 }
  0x6d   : > { %v942_v42 = vor.u32 %v941_v25, %v937_v24  ;;  %v3601_v12 = vrot.slane %v945_v53, 5  ;;  %vm3612_vm15 = vcmp.ne.s32.totalorder %v1167_v54, %v3423_v52  ;;  %v3655_v54 = vadd.s32 56, %v3389_v23 }
  0xa1   : > { %v3411_v43 = vpop.f32.mrf.mxu1 }
  0xa3   : > { %v435_v0 = vpop.f32.mrf.mxu0 }
  0xa7   : > { %v3435_v60 = vpop.f32.mrf.mxu2 }
  0xa8   : > { %v3454_v6 = vpop.f32.mrf.mxu3 }
  0xa9   : > { %v3452_v5 = vpop.f32.mrf.mxu1 }
  0xab   : > { %v437_v44 = vpop.f32.mrf.mxu0 }
  0xaf   : > { %v585_v38 = vpop.f32.mrf.mxu2 }
  0xb0   : > { %v3513_v50 = vpop.f32.mrf.mxu3 }
  0xb1   : > { %v505_v37 = vpop.f32.mrf.mxu1 }
  0xb2   : > { %v525_v45 = vmax.f32 %v435_v0, %v505_v37  ;;  %v923_v0 = vrot.slane %v922_v41, 4 }
  0xb3   : > { %v440_v39 = vpop.f32.mrf.mxu0 }
  0xb4   : > { %v603_v57 = vmax.f32 %v525_v45, %v3435_v60  ;;  %v3558_v20 = vsel %vm3438_vm0, %v923_v0, %v927_v1 }
  0xb5   : > { %v995_v59 = vunpack.c.l.b16 %v3558_v20 }
  0xb6   : > { %v681_v60 = vmax.f32 %v603_v57, %v3454_v6  ;;  %v932_v6 = vor.u32 %v931_v56, %v927_v1  ;;  %v1168_v56 = vunpack.c.h.b16 %v1106_v33  ;;  %v1076_v57 = vsel %vm1068_vm3, 65537, %v3234_v27  ;;  %vm3625_vm3 = vmpackc.low %vm3551_vm13, %vm3546_vm10 }
  0xb7   : > { %v588_v31 = vpop.f32.mrf.mxu2  ;;  %v1127_v0 = vshrl.u32 %v1076_v57, 16  ;;  %v1130_v11 = vshll.u32 %v1076_v57, 16  ;;  %v1182_v33 = vunpack.c.h.b16 %v3597_v7  ;;  %vm3680_vm10 = vcmp.ne.s32.totalorder %v995_v59, %v3423_v52 }
  0xb8   : > { %v693_v13 = vadd.f32 %v3521_v58, %v681_v60  ;;  %v933_v36 = vrot.slane %v932_v6, 4  ;;  %v666_v45 = vpop.f32.mrf.mxu3  ;;  %vm3617_vm2 = vcmp.ne.s32.totalorder %v1168_v56, %v3426_v55  ;;  %v4700_v59 = vand.u32 7, %v3655_v54 }
  0xb9   : > { %v507_v19 = vpop.f32.mrf.mxu1  ;;  %v3599_v9 = vrot.slane %v1127_v0, 7 }
  0xba   : > { %v701_v26 = vmax.f32 %v693_v13, 0.0  ;;  %v526_v28 = vmax.f32 %v437_v44, %v507_v19  ;;  %v989_v44 = vunpack.c.h.b16 %v3529_v63  ;;  %v996_v63 = vunpack.c.h.b16 %v3558_v20 }
  0xbb   : > { %v3583_v60 = vsel %vm3438_vm0, %v933_v36, %v937_v24  ;;  %v1175_v20 = vunpack.c.h.b16 %v1115_v2  ;;  %v1132_v35 = vor.u32 %v1130_v11, %v3599_v9  ;;  %v1134_v57 = vrot.slane %v3599_v9, 4 }
  0xbc   : > { %v709_v37 = vpack.c.bf16 %v701_v26, %v701_v26  ;;  %v604_v41 = vmax.f32 %v526_v28, %v585_v38  ;;  %v3574_v38 = vunpack.c.l.b16 %v1216_v62  ;;  %vm3591_vm5 = vcmp.ne.s32.totalorder %v989_v44, %v3426_v55 }
  0xbd   : > { %v1002_v21 = vunpack.c.l.b16 %v3583_v60  ;;  %v1003_v24 = vunpack.c.h.b16 %v3583_v60  ;;  %v1181_v28 = vunpack.c.l.b16 %v3597_v7  ;;  %vm3666_vm8 = vcmp.ne.s32.totalorder %v1175_v20, %v3426_v55  ;;  %vm3702_vm12 = vmpackc.low %vm3591_vm5, %vm3586_vm4 }
  0xbe   : > { %720 = vst.msk [vmem:[#allocation2 + $0x8] sm:$0xf] %vm4698_vm9, %v709_v37  ;;  %v682_v47 = vmax.f32 %v604_v41, %v3513_v50  ;;  %v943_v50 = vrot.slane %v942_v42, 4  ;;  %vm3685_vm13 = vcmp.ne.s32.totalorder %v996_v63, %v3426_v55  ;;  %vm3724_vm5 = vcmp.ne.s32.totalorder %v4700_v59, 7 }
  0xbf   : > { %v590_v34 = vpop.f32.mrf.mxu2 }
  0xc0   : > { %v694_v1 = vadd.f32 %v3521_v58, %v682_v47  ;;  %v3640_v36 = vsel %vm3438_vm0, %v943_v50, %v3601_v12  ;;  %v668_v49 = vpop.f32.mrf.mxu3  ;;  %v3652_v47 = vadd.s32 48, %v3389_v23 }
  0xc1   : > { %v510_v3 = vpop.f32.mrf.mxu1  ;;  %v1010_v23 = vunpack.c.h.b16 %v3640_v36 }
  0xc2   : > { %v702_v6 = vmax.f32 %v694_v1, 0.0  ;;  %v527_v13 = vmax.f32 %v440_v39, %v510_v3  ;;  %v1009_v1 = vunpack.c.l.b16 %v3640_v36 }
  0xc4   : > { %v710_v25 = vpack.c.bf16 %v702_v6, %v702_v6  ;;  %v605_v26 = vmax.f32 %v527_v13, %v588_v31  ;;  %v442_v31 = vpop.f32.mrf.mxu0 }
  0xc5   : > { %v3633_v14 = vld [vmem:[#allocation2 + $0x8] sm:$0xf] }
  0xc6   : > { %721 = vst.msk [vmem:[#allocation2 + $0xc] sm:$0xf] %vm4698_vm9, %v710_v25  ;;  %v683_v39 = vmax.f32 %v605_v26, %v666_v45  ;;  %v1228_v41 = vsel %vm3607_vm14, %v3633_v14, 0  ;;  %v1217_v29 = vsel %vm3625_vm3, %v3633_v14, 0  ;;  %v1299_v42 = vunpack.c.l.b16 %v3633_v14  ;;  %v1246_v44 = vld [vmem:[#allocation2 + $0x8] sm:$0x8]  ;;  %vm3714_vm9 = vmpackc.low %vm3617_vm2, %vm3612_vm15 }
  0xc7   : > { %v1408_v51 = vunpack.c.l.b16 %v1228_v41  ;;  %v1365_v53 = vunpack.c.l.b16 %v1217_v29  ;;  %v1237_v3 = vsel %vm3496_vm1, %v3633_v14, 0  ;;  %v3694_v25 = vsel %vm3463_vm7, %v1125_v15, %v1132_v35  ;;  %v593_v35 = vpop.f32.mrf.mxu2  ;;  %vm3780_vm2 = vmpackc.low %vm3666_vm8, %vm3661_vm6 }
  0xc8   : > { %v695_v45 = vadd.f32 %v3521_v58, %v683_v39  ;;  %v1306_v56 = vpack.c.b16 %v1299_v42, %v1298_v40  ;;  %v1248_v40 = vsel %vm3480_vm11, %v1246_v44, 0  ;;  %v785_v26 = vand.u32 7, %v3652_v47  ;;  %vm3816_vm8 = vmpackc.low %vm3685_vm13, %vm3680_vm10 }
  0xc9   : > { %v512_v2 = vpop.f32.mrf.mxu1  ;;  %v1416_v50 = vpack.c.b16 %v1408_v51, %v3509_v46  ;;  %v1373_v22 = vpack.c.b16 %v1365_v53, %v3574_v38  ;;  %v1523_v44 = vunpack.c.l.b16 %v1248_v40  ;;  %v1481_v51 = vunpack.c.l.b16 %v1237_v3 }
  0xca   : > { %v703_v11 = vmax.f32 %v695_v45, 0.0  ;;  %v528_v6 = vmax.f32 %v442_v31, %v512_v2  ;;  %v1311_v13 = vshrl.u32 %v1306_v56, 16  ;;  %v1314_v8 = vshll.u32 %v1306_v56, 16  ;;  %v671_v2 = vpop.f32.mrf.mxu3 }
  0xcb   : > { %1421 = vrot.lane.b32.xlu2 %v1416_v50, %s3235_s27  ;;  %v3690_v38 = vrot.slane %v1373_v22, 5  ;;  %vm3718_vm4 = vcmp.ne.s32.totalorder %v785_v26, 7  ;;  %vm4762_vm11 = vcmask 257024   ;;  %v1188_v45 = vunpack.c.l.b16 %v3694_v25 }
  0xcc   : > { %v711_v31 = vpack.c.bf16 %v703_v11, %v703_v11  ;;  %v606_v39 = vmax.f32 %v528_v6, %v590_v34  ;;  %v1313_v41 = vrot.slane %v1311_v13, 4  ;;  %v1316_v63 = vrot.slane %v1314_v8, 5  ;;  %v445_v18 = vpop.f32.mrf.mxu0  ;;  %vm1069_vm15 = vmpackc.low %vm3718_vm4, %vm3718_vm4  ;;  %v3071_v6 = vld [vmem:[%s4689_s3 + $0x88] sm:$0xff] }
  0xcd   : > { %1388 = vrot.lane.b32.xlu1 %v3690_v38, %s3236_s28  ;;  %v3708_v15 = vld [vmem:[#allocation2 + $0xc] sm:$0xf]  ;;  %2029 = vmatpush.bf16.msrb.mxu2 %v3071_v6  ;;  %vm3787_vm4 = vcmp.ne.s32.totalorder %v1181_v28, %v3423_v52  ;;  %vm3799_vm6 = vcmp.ne.s32.totalorder %v785_v26, 0  ;;  %vm3844_vm10 = vcmp.ne.s32.totalorder %v1003_v24, %v3426_v55 }
  0xce   : > { %722 = vst.msk [vmem:[#allocation2 + $0x10] sm:$0xf] %vm4762_vm11, %v711_v31  ;;  %v684_v53 = vmax.f32 %v606_v39, %v668_v49  ;;  %v3729_v47 = vor.u32 %v1316_v63, %v1313_v41  ;;  %v1300_v19 = vunpack.c.l.b16 %v3708_v15  ;;  %v1258_v56 = vsel %vm3496_vm1, %v3708_v15, 0  ;;  %vm1070_vm11 = vmpackc.low %vm3724_vm5, %vm3724_vm5 }
  0xcf   : > { %v1249_v49 = vsel %vm3607_vm14, %v3708_v15, 0  ;;  %v1238_v50 = vsel %vm3625_vm3, %v3708_v15, 0  ;;  %v1229_v22 = vsel %vm3702_vm12, %v3708_v15, 0  ;;  %v1218_v8 = vsel %vm3714_vm9, %v3708_v15, 0  ;;  %vm882_vm13 = vmpackc.low %vm3799_vm6, %vm3799_vm6 }
  0xd0   : > { %v696_v32 = vadd.f32 %v3521_v58, %v684_v53  ;;  %1345 = vrot.lane.b32.xlu0 %v3729_v47, %s3237_s29  ;;  %v3756_v40 = vpack.c.b16 %v1300_v19, %v1299_v42  ;;  %v1524_v3 = vunpack.c.l.b16 %v1249_v49  ;;  %v1482_v11 = vunpack.c.l.b16 %v1238_v50 }
  0xd1   : > { %v515_v13 = vpop.f32.mrf.mxu1  ;;  %v1189_v31 = vunpack.c.h.b16 %v3694_v25  ;;  %v3771_v42 = vsel %vm1069_vm15, 65537, %v3234_v27  ;;  %v3774_v39 = vsel %vm1070_vm11, 65537, %v3234_v27  ;;  %v1578_v49 = vunpack.c.l.b16 %v1258_v56  ;;  %v3070_v56 = vld [vmem:[%s4689_s3 + $0x80] sm:$0xff] }
  0xd2   : > { %v704_v41 = vmax.f32 %v696_v32, 0.0  ;;  %v529_v63 = vmax.f32 %v445_v18, %v515_v13  ;;  %v1532_v34 = vpack.c.b16 %v1524_v3, %v1523_v44  ;;  %v1490_v53 = vpack.c.b16 %v1482_v11, %v1481_v51  ;;  %2030 = vmatpush.bf16.msrb.mxu2 %v3070_v56 }
  0xd3   : > { %v1409_v50 = vunpack.c.l.b16 %v1229_v22  ;;  %vm3794_vm5 = vcmp.ne.s32.totalorder %v1182_v33, %v3426_v55  ;;  %v1366_v28 = vunpack.c.l.b16 %v1218_v8  ;;  %v1136_v7 = vshrl.u32 %v3771_v42, 16 }
  0xd4   : > { %v712_v51 = vpack.c.bf16 %v704_v41, %v704_v41  ;;  %v607_v18 = vmax.f32 %v529_v63, %v593_v35  ;;  %1537 = vrot.lane.b32.xlu2 %v1532_v34, %s3236_s28  ;;  %v3810_v22 = vrot.slane %v1490_v53, 5  ;;  %v1139_v35 = vshll.u32 %v3771_v42, 16  ;;  %v595_v42 = vpop.f32.mrf.mxu2 }
  0xd5   : > { %v3808_v33 = vld [vmem:[#allocation2 + $0x10] sm:$0xf]  ;;  %v1145_v3 = vshrl.u32 %v3774_v39, 16  ;;  %vm4773_vm15 = vcmask 257024   ;;  %vm3863_vm11 = vcmp.ne.s32.totalorder %v1188_v45, %v3423_v52  ;;  %v3872_v56 = vrot.slane %v1136_v7, 7 }
  0xd6   : > { %723 = vst.msk [vmem:[#allocation2 + $0x14] sm:$0xf] %vm4773_vm15, %v712_v51  ;;  %v1259_v6 = vsel %vm3625_vm3, %v3808_v33, 0  ;;  %v685_v13 = vmax.f32 %v607_v18, %v671_v2  ;;  %v1230_v20 = vsel %vm3816_vm8, %v3808_v33, 0  ;;  %v1219_v46 = vsel %vm3780_vm2, %v3808_v33, 0  ;;  %v447_v51 = vpop.f32.mrf.mxu0 }
  0xd7   : > { %v1579_v8 = vunpack.c.l.b16 %v1259_v6  ;;  %v1410_v41 = vunpack.c.l.b16 %v1230_v20  ;;  %v1367_v63 = vunpack.c.l.b16 %v1219_v46  ;;  %v1301_v34 = vunpack.c.l.b16 %v3808_v33  ;;  %v673_v20 = vpop.f32.mrf.mxu3 }
  0xd8   : > { %vm3837_vm3 = vcmp.ne.s32.totalorder %v1002_v21, %v3423_v52  ;;  %v697_v53 = vadd.f32 %v3521_v58, %v685_v13  ;;  %1504 = vrot.lane.b32.xlu0 %v3810_v22, %s3237_s29  ;;  %v1239_v21 = vsel %vm3714_vm9, %v3808_v33, 0  ;;  %v1250_v60 = vsel %vm3702_vm12, %v3808_v33, 0 }
  0xd9   : > { %vm3868_vm15 = vcmp.ne.s32.totalorder %v1189_v31, %v3426_v55  ;;  %v1587_v6 = vpack.c.b16 %v1579_v8, %v1578_v49  ;;  %v517_v13 = vpop.f32.mrf.mxu1  ;;  %v1417_v46 = vpack.c.b16 %v1410_v41, %v1409_v50  ;;  %v1374_v37 = vpack.c.b16 %v1367_v63, %v1366_v28 }
  0xda   : > { %v1307_v25 = vpack.c.b16 %v1301_v34, %v1300_v19  ;;  %v705_v45 = vmax.f32 %v697_v53, 0.0  ;;  %v530_v59 = vmax.f32 %v447_v51, %v517_v13  ;;  %v3878_v11 = vrot.slane %v1145_v3, 7 }
  0xdb   : > { %v3886_v31 = vsel %vm882_vm13, 65537, %v3234_v27  ;;  %v3888_v49 = vrot.slane %v1587_v6, 5  ;;  %v3890_v50 = vrot.slane %v1374_v37, 5  ;;  %vm3895_vm1 = vcmp.ne.s32.totalorder %v1009_v1, %v3423_v52 }
  0xdc   : > { %v1319_v28 = vshrl.u32 %v1307_v25, 16  ;;  %v1322_v7 = vshll.u32 %v1307_v25, 16  ;;  %vm3902_vm14 = vcmp.ne.s32.totalorder %v1010_v23, %v3426_v55  ;;  %v713_v3 = vpack.c.bf16 %v705_v45, %v705_v45  ;;  %1423 = vrot.lane.b32.xlu2 %v1417_v46, %s3235_s27  ;;  %v598_v32 = vpop.f32.mrf.mxu2 }
  0xdd   : > { %v608_v8 = vmax.f32 %v530_v59, %v595_v42  ;;  %v1483_v37 = vunpack.c.l.b16 %v1239_v21  ;;  %v3907_v41 = vunpack.c.l.b16 %v1250_v60  ;;  %vm4786_vm6 = vcmask 1042432   ;;  %v3912_v63 = vld [vmem:[#allocation2 + $0x14] sm:$0xf] }
  0xde   : > { %v1381_v1 = vsel %vm4786_vm6, %v3690_v38, %v3890_v50  ;;  %v1321_v53 = vrot.slane %v1319_v28, 4  ;;  %v1324_v51 = vrot.slane %v1322_v7, 5  ;;  %v1746_v36 = vshrl.u32 %v3888_v49, 16  ;;  %vm3930_vm6 = vmpackc.low %vm3794_vm5, %vm3787_vm4 }
  0xdf   : > { %vm4787_vm13 = vcmask 257024   ;;  %v686_v23 = vmax.f32 %v608_v8, %v673_v20  ;;  %1390 = vrot.lane.b32.xlu1 %v1381_v1, %s3236_s28  ;;  %v1260_v59 = vsel %vm3714_vm9, %v3912_v63, 0  ;;  %v1240_v42 = vsel %vm3780_vm2, %v3912_v63, 0  ;;  %vm3957_vm4 = vmpackc.low %vm3844_vm10, %vm3837_vm3 }
  0xe0   : > { %724 = vst.msk [vmem:[#allocation2 + $0x18] sm:$0xf] %vm4787_vm13, %v713_v3  ;;  %v1251_v38 = vsel %vm3816_vm8, %v3912_v63, 0  ;;  %v3934_v60 = vor.u32 %v1324_v51, %v1321_v53  ;;  %v1484_v62 = vunpack.c.l.b16 %v1240_v42  ;;  %v1141_v13 = vor.u32 %v1139_v35, %v3872_v56  ;;  %vm3967_vm5 = vmpackc.low %vm3868_vm15, %vm3863_vm11 }
  0xe1   : > { %v1526_v6 = vunpack.c.l.b16 %v1251_v38  ;;  %v698_v20 = vadd.f32 %v3521_v58, %v686_v23  ;;  %v1580_v46 = vunpack.c.l.b16 %v1260_v59  ;;  %v3938_v25 = vrot.slane %v1746_v36, 3  ;;  %v520_v28 = vpop.f32.mrf.mxu1  ;;  %vm4797_vm10 = vmmov %vm4787_vm13 }
  0xe2   : > { %v1749_v45 = vshll.u32 %v3888_v49, 16  ;;  %vm4790_vm9 = vsmask.f32 3328  ;;  %v1491_v7 = vpack.c.b16 %v1484_v62, %v1483_v37  ;;  %v1302_v3 = vunpack.c.l.b16 %v3912_v63  ;;  %v676_v37 = vpop.f32.mrf.mxu3  ;;  %vm4004_vm11 = vmpackc.low %vm3902_vm14, %vm3895_vm1 }
  0xe3   : > { %v1326_v44 = vsel %vm4790_vm9, %v3729_v47, %v3934_v60  ;;  %v1220_v35 = vsel %vm3930_vm6, %v3912_v63, 0  ;;  %v706_v8 = vmax.f32 %v698_v20, 0.0  ;;  %v531_v1 = vmax.f32 %v3411_v43, %v520_v28 }
  0xe4   : > { %1347 = vrot.lane.b32.xlu0 %v1326_v44, %s3237_s29  ;;  %v1533_v53 = vpack.c.b16 %v1526_v6, %v3907_v41  ;;  %v3951_v51 = vrot.slane %v1749_v45, 4  ;;  %v3961_v36 = vrot.slane %v1491_v7, 5  ;;  %v1368_v41 = vunpack.c.l.b16 %v1220_v35 }
  0xe5   : > { %v1231_v48 = vsel %vm3957_vm4, %v3912_v63, 0  ;;  %v1142_v2 = vsel %vm3463_vm7, %v1134_v57, %v1141_v13  ;;  %v714_v23 = vpack.c.bf16 %v706_v8, %v706_v8  ;;  %v609_v59 = vmax.f32 %v531_v1, %v598_v32 }
  0xe6   : > { %v1752_v24 = vor.u32 %v3951_v51, %v3938_v25  ;;  %v1143_v18 = vrot.slane %v3872_v56, 4  ;;  %vm4795_vm3 = vcmask 1042432   ;;  %v3986_v62 = vunpack.c.l.b16 %v1231_v48 }
  0xe7   : > { %v3981_v42 = vld [vmem:[#allocation2 + $0x18] sm:$0xf]  ;;  %v1497_v38 = vsel %vm4795_vm3, %v3810_v22, %v3961_v36  ;;  %v4796_v9 = vshll.u32 %v3774_v39, 16  ;;  %v1195_v57 = vunpack.c.l.b16 %v1142_v2  ;;  %725 = vst.msk [vmem:[#allocation2 + $0x1c] sm:$0xf] %vm4797_vm10, %v714_v23  ;;  %v687_v56 = vmax.f32 %v609_v59, %v676_v37  ;;  %vm4803_vm15 = vmmov %vm4795_vm3 }
  0xe8   : > { %v1261_v13 = vsel %vm3780_vm2, %v3981_v42, 0  ;;  %1506 = vrot.lane.b32.xlu1 %v1497_v38, %s3237_s29  ;;  %v1303_v20 = vunpack.c.l.b16 %v3981_v42  ;;  %v1221_v22 = vsel %vm3967_vm5, %v3981_v42, 0  ;;  %v1232_v32 = vsel %vm4004_vm11, %v3981_v42, 0  ;;  %vm4804_vm3 = vmmov %vm4797_vm10 }
  0xe9   : > { %v1150_v6 = vor.u32 %v4796_v9, %v3878_v11  ;;  %v1581_v45 = vunpack.c.l.b16 %v1261_v13  ;;  %v1369_v4 = vunpack.c.l.b16 %v1221_v22  ;;  %v1241_v28 = vsel %vm3930_vm6, %v3981_v42, 0  ;;  %v522_v8 = vpop.f32.mrf.mxu1 }
  0xea   : > { %v699_v44 = vadd.f32 %v3521_v58, %v687_v56  ;;  %v1308_v19 = vpack.c.b16 %v1303_v20, %v1302_v3  ;;  %v4019_v0 = vunpack.c.l.b16 %v1232_v32  ;;  %v1196_v7 = vunpack.c.h.b16 %v1142_v2 }
  0xeb   : > { %v1588_v35 = vpack.c.b16 %v1581_v45, %v1580_v46  ;;  %vm1714_vm14 = vsmask.f32 4352  ;;  %v1375_v1 = vpack.c.b16 %v1369_v4, %v1368_v41  ;;  %v1485_v37 = vunpack.c.l.b16 %v1241_v28  ;;  %v600_v41 = vpop.f32.mrf.mxu2  ;;  %v678_v28 = vpop.f32.mrf.mxu3 }
  0xec   : > { %v1252_v48 = vsel %vm3957_vm4, %v3981_v42, 0  ;;  %v4800_v23 = vand.u32 7, %v3655_v54  ;;  %v707_v38 = vmax.f32 %v699_v44, 0.0  ;;  %v532_v9 = vmax.f32 %v3452_v5, %v522_v8  ;;  %1539 = vrot.lane.b32.xlu0 %v1533_v53, %s3236_s28 }
  0xed   : > { %v1328_v46 = vshrl.u32 %v1308_v19, 16  ;;  %v1331_v2 = vshll.u32 %v1308_v19, 16  ;;  %vm1601_vm2 = vcmask 261120   ;;  %v4032_v13 = vrot.slane %v1588_v35, 5 }
  0xee   : > { %vm4026_vm1 = vcmp.ne.s32.totalorder %v4800_v23, 0  ;;  %v4034_v56 = vrot.slane %v1375_v1, 5  ;;  %v1418_v54 = vpack.c.b16 %v4019_v0, %v3986_v62  ;;  %v1151_v22 = vsel %vm3463_vm7, %v1143_v18, %v1150_v6  ;;  %v4043_v44 = vld [vmem:[#allocation2 + $0x1c] sm:$0xf]  ;;  %vm4805_vm7 = vmmov %vm4803_vm15 }
  0xef   : > { %v715_v45 = vpack.c.bf16 %v707_v38, %v707_v38  ;;  %v610_v4 = vmax.f32 %v532_v9, %v600_v41  ;;  %v1330_v32 = vrot.slane %v1328_v46, 4  ;;  %v1333_v5 = vrot.slane %v1331_v2, 5 }
  0xf0   : > { %v1594_v53 = vsel %vm4803_vm15, %v3888_v49, %v4032_v13  ;;  %v4045_v19 = vunpack.c.l.b16 %v1252_v48  ;;  %vm1199_vm13 = vcmp.ne.s32.totalorder %v1195_v57, %v3423_v52  ;;  %vm1200_vm9 = vcmp.ne.s32.totalorder %v1196_v7, %v3426_v55  ;;  %1559 = vrot.lane.b32.xlu1 %v3934_v60, %s3235_s27 }
  0xf1   : > { %726 = vst.msk [vmem:[#allocation2 + $0x20] sm:$0xf] %vm4804_vm3, %v715_v45  ;;  %v688_v10 = vmax.f32 %v610_v4, %v678_v28  ;;  %v4052_v18 = vor.u32 %v1333_v5, %v1330_v32  ;;  %v1754_v6 = vshrl.u32 %v1594_v53, 16  ;;  %v1757_v35 = vshll.u32 %v1594_v53, 16  ;;  %vm4066_vm10 = vmpackc.low %vm1200_vm9, %vm1199_vm13  ;;  %v4084_v28 = vld [vmem:[#allocation2 + $0x28] sm:$0xf] }
  0xf2   : > { %v1383_v49 = vsel %vm4805_vm7, %v3890_v50, %v4034_v56  ;;  %v1262_v57 = vsel %vm3930_vm6, %v4043_v44, 0  ;;  %v1242_v7 = vsel %vm3967_vm5, %v4043_v44, 0  ;;  %v1253_v8 = vsel %vm4004_vm11, %v4043_v44, 0  ;;  %vm883_vm9 = vmpackc.low %vm4026_vm1, %vm4026_vm1 }
  0xf3   : > { %v700_v48 = vadd.f32 %v3521_v58, %v688_v10  ;;  %vm4808_vm15 = vsmask.f32 3328  ;;  %v1756_v21 = vrot.slane %v1754_v6, 3  ;;  %v1759_v23 = vrot.slane %v1757_v35, 4 }
  0xf4   : > { %v1335_v50 = vsel %vm4808_vm15, %v3934_v60, %v4052_v18  ;;  %v1486_v38 = vunpack.c.l.b16 %v1242_v7  ;;  %v1528_v9 = vunpack.c.l.b16 %v1253_v8  ;;  %v1304_v46 = vunpack.c.l.b16 %v4043_v44 }
  0xf5   : > { %1561 = vrot.lane.b32.xlu2 %v1335_v50, %s3235_s27  ;;  %v1202_v2 = vunpack.c.l.b16 %v1151_v22  ;;  %v708_v41 = vmax.f32 %v700_v48, 0.0  ;;  %1349 = vrot.lane.b32.xlu0 %v1335_v50, %s3237_s29  ;;  %v4077_v45 = vor.u32 %v1759_v23, %v1756_v21  ;;  %v1203_v4 = vunpack.c.h.b16 %v1151_v22 }
  0xf6   : > { %v1222_v58 = vsel %vm4066_vm10, %v4043_v44, 0  ;;  %v1582_v60 = vunpack.c.l.b16 %v1262_v57  ;;  %v1492_v32 = vpack.c.b16 %v1486_v38, %v1485_v37  ;;  %v1534_v5 = vpack.c.b16 %v1528_v9, %v4045_v19 }
  0xf7   : > { %vm1206_vm6 = vcmp.ne.s32.totalorder %v1202_v2, %v3423_v52  ;;  %v716_v53 = vpack.c.bf16 %v708_v41, %v708_v41  ;;  %v1761_v10 = vsel %vm1714_vm14, %v1752_v24, %v4077_v45  ;;  %vm1207_vm13 = vcmp.ne.s32.totalorder %v1203_v4, %v3426_v55 }
  0xf8   : > { %v1370_v22 = vunpack.c.l.b16 %v1222_v58  ;;  %2830 = vmatmul.msk.bf16.vlgmr.msrb.gmra.mxu2 %vm1601_vm2, %v1761_v10  ;;  %v4096_v37 = vld [vmem:[#allocation2 + $0x20] sm:$0xf]  ;;  %v4098_v19 = vrot.slane %v1492_v32, 5  ;;  %vm4100_vm3 = vmpackc.low %vm1207_vm13, %vm1206_vm6  ;;  %v4811_v25 = vshrl.u32 %v3563_v30, 16  ;;  %v955_v24 = vshll.u32 %v3886_v31, 16  ;;  %1392 = vrot.lane.b32.xlu1 %v1383_v49, %s3236_s28 }
  0xf9   : > { %v959_v35 = vshrl.u32 %v3886_v31, 16  ;;  %vm4812_vm7 = vcmask 257024   ;;  %v1263_v57 = vsel %vm3967_vm5, %v4096_v37, 0  ;;  %v1305_v7 = vunpack.c.l.b16 %v4096_v37 }
  0xfa   : > { %v951_v51 = vrot.slane %v4811_v25, 4  ;;  %727 = vst.msk [vmem:[#allocation2 + $0x24] sm:$0xf] %vm4812_vm7, %v716_v53  ;;  %v1223_v8 = vsel %vm4100_vm3, %v4096_v37, 0  ;;  %v1265_v30 = vsel %vm4100_vm3, %v4084_v28, 0  ;;  %v1583_v48 = vunpack.c.l.b16 %v1263_v57 }
  0xfb   : > { %vm4813_vm15 = vcmask 1042432   ;;  %v1371_v50 = vunpack.c.l.b16 %v1223_v8  ;;  %v4129_v43 = vsel %vm883_vm9, 65537, %v3234_v27  ;;  %v1309_v49 = vpack.c.b16 %v1305_v7, %v1304_v46 }
  0xfc   : > { %v1499_v31 = vsel %vm4813_vm15, %v3961_v36, %v4098_v19  ;;  %v1243_v21 = vsel %vm4066_vm10, %v4096_v37, 0  ;;  %v952_v36 = vor.u32 %v951_v51, %v3601_v12  ;;  %v957_v23 = vrot.slane %v955_v24, 5  ;;  %vm4814_vm5 = vmmov %vm4813_vm15 }
  0xfd   : > { %1425 = vrot.lane.b32.xlu2 %v1418_v54, %s3235_s27  ;;  %v1589_v59 = vpack.c.b16 %v1583_v48, %v1582_v60  ;;  %v1376_v27 = vpack.c.b16 %v1371_v50, %v1370_v22  ;;  %v1585_v38 = vunpack.c.l.b16 %v1265_v30  ;;  %v961_v9 = vrot.slane %v959_v35, 4  ;;  %1508 = vrot.lane.b32.xlu0 %v1499_v31, %s3237_s29 }
  0xfe   : > { %v1337_v2 = vshrl.u32 %v1309_v49, 16  ;;  %v1340_v41 = vshll.u32 %v1309_v49, 16  ;;  %v953_v4 = vrot.slane %v952_v36, 4  ;;  %v965_v58 = vshll.u32 %v4129_v43, 16 }
  0xff   : > { %v1595_v32 = vrot.slane %v1589_v59, 5  ;;  %v4145_v53 = vrot.slane %v1376_v27, 5  ;;  %v1487_v12 = vunpack.c.l.b16 %v1243_v21  ;;  %v962_v10 = vor.u32 %v961_v9, %v957_v23 }
 0x100   : > { %v1339_v25 = vrot.slane %v1337_v2, 4  ;;  %v1342_v51 = vrot.slane %v1340_v41, 5  ;;  %v958_v62 = vsel %vm3438_vm0, %v953_v4, %v957_v23  ;;  %v4149_v0 = vrot.slane %v965_v58, 5  ;;  %1541 = vrot.lane.b32.xlu1 %v1534_v5, %s3236_s28 }
 0x101   : > { %v1596_v54 = vsel %vm4814_vm5, %v4032_v13, %v1595_v32  ;;  %v4153_v60 = vld [vmem:[#allocation2 + $0x24] sm:$0xf]  ;;  %v963_v22 = vrot.slane %v962_v10, 4  ;;  %v1016_v24 = vunpack.c.l.b16 %v958_v62  ;;  %v1548_v35 = vunpack.c.l.b16 %v4084_v28 }
 0x102   : > { %v4157_v57 = vor.u32 %v1342_v51, %v1339_v25  ;;  %v1779_v8 = vshrl.u32 %v1596_v54, 16  ;;  %v1782_v30 = vshll.u32 %v1596_v54, 16  ;;  %v1264_v48 = vsel %vm4066_vm10, %v4153_v60, 0 }
 0x103   : > { %v1584_v31 = vunpack.c.l.b16 %v1264_v48  ;;  %v1244_v13 = vsel %vm4100_vm3, %v4153_v60, 0  ;;  %v968_v50 = vsel %vm3438_vm0, %v963_v22, %v4149_v0  ;;  %v1017_v49 = vunpack.c.h.b16 %v958_v62  ;;  %vm4818_vm3 = vmmov %vm4814_vm5 }
 0x104   : > { %vm4815_vm1 = vsmask.f32 3328  ;;  %v1781_v21 = vrot.slane %v1779_v8, 3  ;;  %v1784_v36 = vrot.slane %v1782_v30, 4  ;;  %v1488_v23 = vunpack.c.l.b16 %v1244_v13  ;;  %vm4821_vm15 = vmmov %vm4818_vm3 }
 0x105   : > { %v1344_v5 = vsel %vm4815_vm1, %v4052_v18, %v4157_v57  ;;  %vm1020_vm10 = vcmp.ne.s32.totalorder %v1016_v24, %v3423_v52  ;;  %vm1021_vm6 = vcmp.ne.s32.totalorder %v1017_v49, %v3426_v55  ;;  %v1023_v1 = vunpack.c.l.b16 %v968_v50  ;;  %vm4822_vm5 = vmmov %vm4818_vm3 }
 0x106   : > { %1563 = vrot.lane.b32.xlu2 %v1344_v5, %s3235_s27  ;;  %v1024_v6 = vunpack.c.h.b16 %v968_v50  ;;  %1351 = vrot.lane.b32.xlu0 %v1344_v5, %s3237_s29  ;;  %v4175_v61 = vor.u32 %v1784_v36, %v1781_v21  ;;  %v1493_v59 = vpack.c.b16 %v1488_v23, %v1487_v12  ;;  %vm4177_vm0 = vmpackc.low %vm1021_vm6, %vm1020_vm10  ;;  %v1432_v18 = vunpack.c.l.b16 %v4153_v60 }
 0x107   : > { %v1590_v9 = vpack.c.b16 %v1585_v38, %v1584_v31  ;;  %vm1027_vm13 = vcmp.ne.s32.totalorder %v1023_v1, %v3423_v52  ;;  %v1233_v2 = vsel %vm4177_vm0, %v4043_v44, 0  ;;  %v1254_v41 = vsel %vm4177_vm0, %v4096_v37, 0  ;;  %v1236_v1 = vld [vmem:[#allocation2 + $0x28] sm:$0x1] }
 0x108   : > { %vm1028_vm9 = vcmp.ne.s32.totalorder %v1024_v6, %v3426_v55  ;;  %v1786_v4 = vsel %vm1714_vm14, %v4077_v45, %v4175_v61  ;;  %v1385_v38 = vsel %vm4818_vm3, %v4034_v56, %v4145_v53  ;;  %v4196_v58 = vrot.slane %v1493_v59, 5  ;;  %v1046_v59 = vld [vmem:[#allocation2 + $0x24] sm:$0x1] }
 0x109   : > { %vm4198_vm7 = vmpackc.low %vm1028_vm9, %vm1027_vm13  ;;  %v1413_v10 = vunpack.c.l.b16 %v1233_v2  ;;  %2831 = vmatmul.msk.bf16.gmra.mxu2 %vm1601_vm2, %v1786_v4  ;;  %v1549_v56 = vpack.c.b16 %v1548_v35, %v1432_v18  ;;  %v4211_v51 = vrot.slane %v1590_v9, 5  ;;  %1394 = vrot.lane.b32.xlu1 %v1385_v38, %s3236_s28  ;;  %v1529_v22 = vunpack.c.l.b16 %v1254_v41 }
 0x10a   : > { %v1234_v25 = vsel %vm4198_vm7, %v4096_v37, 0  ;;  %v1255_v45 = vsel %vm4198_vm7, %v4153_v60, 0  ;;  %v1501_v62 = vsel %vm4821_vm15, %v4098_v19, %v4196_v58  ;;  %v1152_v24 = vrot.slane %v3878_v11, 4  ;;  %v1257_v19 = vld [vmem:[#allocation2 + $0x2c] sm:$0x1]  ;;  %vm4826_vm15 = vmmov %vm4818_vm3 }
 0x10b   : > { %v1414_v54 = vunpack.c.l.b16 %v1234_v25  ;;  %v1551_v8 = vshrl.u32 %v1549_v56, 16  ;;  %v1554_v30 = vshll.u32 %v1549_v56, 16  ;;  %v1598_v48 = vsel %vm4822_vm5, %v1595_v32, %v4211_v51 }
 0x10c   : > { %v969_v31 = vshrl.u32 %v4129_v43, 16  ;;  %v1530_v13 = vunpack.c.l.b16 %v1255_v45  ;;  %v1804_v50 = vshrl.u32 %v1598_v48, 16  ;;  %v1807_v49 = vshll.u32 %v1598_v48, 16 }
 0x10d   : > { %v1419_v35 = vpack.c.b16 %v1414_v54, %v1413_v10  ;;  %v1553_v5 = vrot.slane %v1551_v8, 4  ;;  %v1556_v21 = vrot.slane %v1554_v30, 5  ;;  %v1209_v36 = vunpack.c.l.b16 %v1152_v24 }
 0x10e   : > { %v1210_v23 = vunpack.c.h.b16 %v1152_v24  ;;  %1510 = vrot.lane.b32.xlu0 %v1501_v62, %s3237_s29  ;;  %v1806_v11 = vrot.slane %v1804_v50, 3  ;;  %v1809_v6 = vrot.slane %v1807_v49, 4  ;;  %v971_v32 = vrot.slane %v969_v31, 4 }
 0x10f   : > { %1427 = vrot.lane.b32.xlu2 %v1419_v35, %s3235_s27  ;;  %v1438_v43 = vshrl.u32 %v3756_v40, 16  ;;  %v4224_v9 = vor.u32 %v1556_v21, %v1553_v5  ;;  %vm1213_vm1 = vcmp.ne.s32.totalorder %v1209_v36, %v3423_v52  ;;  %v1535_v2 = vpack.c.b16 %v1530_v13, %v1529_v22 }
 0x110   : > { %vm1214_vm10 = vcmp.ne.s32.totalorder %v1210_v23, %v3426_v55  ;;  %v972_v41 = vor.u32 %v971_v32, %v4149_v0  ;;  %v1441_v4 = vshll.u32 %v3756_v40, 16  ;;  %v1039_v38 = vsel %vm3702_vm12, %v3633_v14, 0 }
 0x111   : > { %vm1215_vm6 = vmpackc.low %vm1214_vm10, %vm1213_vm1  ;;  %v4233_v10 = vor.u32 %v1809_v6, %v1806_v11  ;;  %1543 = vrot.lane.b32.xlu1 %v1535_v2, %s3236_s28  ;;  %v1440_v22 = vrot.slane %v1438_v43, 4  ;;  %vm4823_vm13 = vsmask.f32 3328  ;;  %v1040_v14 = vsel %vm3816_vm8, %v3708_v15, 0 }
 0x112   : > { %v1224_v25 = vsel %vm1215_vm6, %v1046_v59, 0  ;;  %v1266_v45 = vsel %vm1215_vm6, %v1257_v19, 0  ;;  %v1245_v56 = vsel %vm1215_vm6, %v1236_v1, 0  ;;  %v1558_v0 = vsel %vm4823_vm13, %v4157_v57, %v4224_v9 }
 0x113   : > { %v1372_v62 = vunpack.c.l.b16 %v1224_v25  ;;  %v1586_v54 = vunpack.c.l.b16 %v1266_v45  ;;  %v1489_v24 = vunpack.c.l.b16 %v1245_v56  ;;  %v973_v40 = vrot.slane %v972_v41, 4 }
 0x114   : > { %v4242_v29 = vunpack.c.l.b16 %v1039_v38  ;;  %v4244_v31 = vunpack.c.l.b16 %v1040_v14  ;;  %v1443_v50 = vrot.slane %v1441_v4, 5  ;;  %v1434_v49 = vpack.c.b16 %v1302_v3, %v1301_v34 }
 0x115   : > { %v1377_v8 = vpack.c.b16 %v1372_v62, %v1372_v62  ;;  %v1591_v30 = vpack.c.b16 %v1586_v54, %v1586_v54  ;;  %v1494_v48 = vpack.c.b16 %v1489_v24, %v1489_v24  ;;  %v1030_v35 = vunpack.c.l.b16 %v973_v40 }
 0x116   : > { %v1031_v13 = vunpack.c.h.b16 %v973_v40  ;;  %1353 = vrot.lane.b32.xlu0 %v4157_v57, %s3237_s29  ;;  %v1286_v21 = vpack.c.b16 %v4244_v31, %v4242_v29  ;;  %v1446_v36 = vshrl.u32 %v1434_v49, 16  ;;  %v1449_v23 = vshll.u32 %v1434_v49, 16 }
 0x117   : > { %1565 = vrot.lane.b32.xlu2 %v1558_v0, %s3235_s27  ;;  %v1386_v15 = vrot.slane %v1377_v8, 5  ;;  %v1599_v26 = vrot.slane %v1591_v30, 5  ;;  %v1502_v5 = vrot.slane %v1494_v48, 5  ;;  %vm1034_vm12 = vcmp.ne.s32.totalorder %v1030_v35, %v3423_v52  ;;  %v3060_v8 = vld [vmem:[%s4689_s3 + $0x30] sm:$0xff]  ;;  %v3069_v30 = vld [vmem:[%s4689_s3 + $0x78] sm:$0xff] }
 0x118   : > { %vm1035_vm8 = vcmp.ne.s32.totalorder %v1031_v13, %v3426_v55  ;;  %v1811_v34 = vsel %vm1714_vm14, %v4175_v61, %v4233_v10  ;;  %v1041_v19 = vsel %vm3957_vm4, %v3808_v33, 0  ;;  %v4278_v1 = vor.u32 %v1443_v50, %v1440_v22  ;;  %v3061_v33 = vld [vmem:[%s4689_s3 + $0x38] sm:$0xff]  ;;  %vm4827_vm4 = vmmov %vm4818_vm3  ;;  %1994 = vmatpush.bf16.msra.mxu1 %v3069_v30  ;;  %v3068_v13 = vld [vmem:[%s4689_s3 + $0x70] sm:$0xff] }
 0x119   : > { %vm4260_vm9 = vmpackc.low %vm1035_vm8, %vm1034_vm12  ;;  %v1600_v57 = vsel %vm4818_vm3, %v4211_v51, %v1599_v26  ;;  %2832 = vmatmul.msk.bf16.gmra.mxu2 %vm1601_vm2, %v1811_v34  ;;  %v1387_v52 = vsel %vm4826_vm15, %v4145_v53, %v1386_v15  ;;  %v1448_v11 = vrot.slane %v1446_v36, 4  ;;  %v1451_v53 = vrot.slane %v1449_v23, 5  ;;  %1965 = vmatpush.bf16.msrb.mxu0 %v3061_v33  ;;  %v3057_v26 = vld [vmem:[%s4689_s3 + $0x18] sm:$0xff]  ;;  %v3066_v23 = vld [vmem:[%s4689_s3 + $0x60] sm:$0xff] }
 0x11a   : > { %v1235_v55 = vsel %vm4260_vm9, %v4153_v60, 0  ;;  %v1256_v61 = vsel %vm4260_vm9, %v4084_v28, 0  ;;  %1396 = vrot.lane.b32.xlu1 %v1387_v52, %s3236_s28  ;;  %v1503_v6 = vsel %vm4827_vm4, %v4196_v58, %v1502_v5  ;;  %v1829_v59 = vshrl.u32 %v1600_v57, 16  ;;  %v3058_v60 = vld [vmem:[%s4689_s3 + $0x20] sm:$0xff]  ;;  %v3056_v5 = vld [vmem:[%s4689_s3 + $0x10] sm:$0xff]  ;;  %v3055_v34 = vld [vmem:[%s4689_s3 + $0x8] sm:$0xff] }
 0x11b   : > { %v1415_v51 = vunpack.c.l.b16 %v1235_v55  ;;  %v1531_v47 = vunpack.c.l.b16 %v1256_v61  ;;  %v1832_v32 = vshll.u32 %v1600_v57, 16  ;;  %v1042_v28 = vsel %vm4004_vm11, %v3912_v63, 0  ;;  %vm4828_vm11 = vmmov %vm4823_vm13  ;;  %v3065_v57 = vld [vmem:[%s4689_s3 + $0x58] sm:$0xff]  ;;  %v3054_v52 = vld [vmem:[%s4689_s3] sm:$0xff] }
 0x11c   : > { %v1452_v2 = vor.u32 %v1451_v53, %v1448_v11  ;;  %v4289_v41 = vunpack.c.l.b16 %v1041_v19  ;;  %v4291_v4 = vunpack.c.l.b16 %v1042_v28  ;;  %v1435_v25 = vpack.c.b16 %v1304_v46, %v1303_v20  ;;  %1995 = vmatpush.bf16.msra.mxu1 %v3068_v13  ;;  %v851_v19 = vld [vmem:[#allocation2] sm:$0x8]  ;;  %v3169_v61 = vld [vmem:[#allocation2 + $0x4] sm:$0xf] }
 0x11d   : > { %v1420_v43 = vpack.c.b16 %v1415_v51, %v1415_v51  ;;  %v1536_v38 = vpack.c.b16 %v1531_v47, %v1531_v47  ;;  %v1043_v58 = vsel %vm4177_vm0, %v3981_v42, 0  ;;  %v1044_v63 = vsel %vm4198_vm7, %v4043_v44, 0  ;;  %vm4829_vm0 = vmmov %vm4828_vm11  ;;  %1966 = vmatpush.bf16.msrb.mxu0 %v3060_v8 }
 0x11e   : > { %1512 = vrot.lane.b32.xlu0 %v1503_v6, %s3237_s29  ;;  %v4307_v39 = vsel %vm4828_vm11, %v4278_v1, %v1452_v2  ;;  %v1287_v45 = vpack.c.b16 %v4291_v4, %v4289_v41  ;;  %v4311_v20 = vunpack.c.l.b16 %v1043_v58  ;;  %v4313_v46 = vunpack.c.l.b16 %v1044_v63  ;;  %vm4830_vm7 = vmmov %vm4829_vm0  ;;  %v3064_v6 = vld [vmem:[%s4689_s3 + $0x50] sm:$0xff]  ;;  %s3032_s29 = sshll.u32 %s3314_s17, 2 }
 0x11f   : > { %1429 = vrot.lane.b32.xlu2 %v1420_v43, %s3235_s27  ;;  %v1455_v42 = vshrl.u32 %v1435_v25, 16  ;;  %v1458_v27 = vshll.u32 %v1435_v25, 16  ;;  %v1831_v56 = vrot.slane %v1829_v59, 3  ;;  %v1834_v12 = vrot.slane %v1832_v32, 4  ;;  %s2575_s11 = scalar_lea.hbm %s4696_s10, %s3032_s29 }
 0x120   : > { %v1288_v44 = vpack.c.b16 %v4313_v46, %v4311_v20  ;;  %v1045_v24 = vsel %vm4260_vm9, %v4096_v37, 0  ;;  %vm4831_vm5 = vnez %v4721_v17  ;;  %vm4832_vm1 = vnez %v4739_v16  ;;  %v3063_v17 = vld [vmem:[%s4689_s3 + $0x48] sm:$0xff]  ;;  %v3062_v16 = vld [vmem:[%s4689_s3 + $0x40] sm:$0xff]  ;;  %s2579_s20 = sshll.u32 %s2575_s11, 4  ;;  %s2580_s20 = int_to_ptr.hbm [resolvable:$true] %s2579_s20 }
 0x121   : > { %v1457_v62 = vrot.slane %v1455_v42, 4  ;;  %v1460_v54 = vrot.slane %v1458_v27, 5  ;;  %v1835_v22 = vor.u32 %v1834_v12, %v1831_v56  ;;  %v1037_v55 = vsel %vm4831_vm5, %v851_v19, 0  ;;  %s3184_s26 = sshra.s32 %s2580_s20, 4  ;;  %s3185_s26 = int_to_ptr.hbm [resolvable:$true] %s3184_s26 }
 0x122   : > { %1545 = vrot.lane.b32.xlu1 %v1536_v38, %s3236_s28  ;;  %v1038_v51 = vsel %vm4832_vm1, %v3169_v61, 0  ;;  %v1276_v11 = vunpack.c.l.b16 %v1037_v55  ;;  %vm1617_vm10 = vcmask 523264   ;;  %vm1628_vm6 = vcmask 785408   ;;  %s2643_s28 = sshll.u32 %s350_s21, 2  ;;  %s3186_s17 = scalar_lea.hbm %s3185_s26, 4 }
 0x123   : > { %v1461_v0 = vor.u32 %v1460_v54, %v1457_v62  ;;  %v1836_v14 = vsel %vm1714_vm14, %v4233_v10, %v1835_v22  ;;  %v3059_v10 = vld [vmem:[%s4689_s3 + $0x28] sm:$0xff]  ;;  %v1277_v53 = vunpack.c.l.b16 %v1038_v51  ;;  %s352_s12 = scalar_lea.vmem [#allocation3], %s2643_s28  ;;  %p3187_p11 = scmp.ne.s32.totalorder %s3185_s26, %s3186_s17 }
 0x124   : > { %1967 = vmatpush.bf16.msrb.mxu0 %v3059_v10  ;;  %s2577_s18 = sshll.u32 %s352_s12, 4  ;;  %s3190_s28 = scalar_lea.hbm %s4696_s10, 8  ;;  %s2578_s18 = int_to_ptr.vmem [resolvable:$true] %s2577_s18 }
 0x125   : > { %v4324_v40 = vsel %vm4829_vm0, %v1452_v2, %v1461_v0  ;;  %v1422_v36 = vpop.permute.xlu2 %1421  ;;  %v1285_v59 = vpack.c.b16 %v1277_v53, %v1276_v11  ;;  %p3188_p12 = pnand %p3187_p11, %p3331_p5  ;;  %p3191_p0 = scmp.lt.s32.totalorder %s3185_s26, %s4696_s10 }
 0x126   : > { %p3192_p1 = scmp.lt.s32.totalorder %s3190_s28, %s3186_s17 }
 0x127   : > { %1567 = vrot.lane.b32.xlu2 %v4224_v9, %s3235_s27  ;;  %v1436_v9 = vpack.c.b16 %v1432_v18, %v1305_v7  ;;  %v3067_v18 = vld [vmem:[%s4689_s3 + $0x68] sm:$0xff]  ;;  %p3189_p13 = pneg %p3188_p12 }
 0x128   : > { %1968 = vmatpush.bf16.msrb.mxu0 %v3058_v60  ;;  %1996 = vmatpush.bf16.msra.mxu1 %v3067_v18  ;;  %p3193_p2 = por %p3192_p1, %p3191_p0 }
 0x129   : > { %2833 = vmatmul.msk.bf16.gmra.mxu2 %vm1601_vm2, %v1836_v14  ;;  %v1464_v48 = vshrl.u32 %v1436_v9, 16  ;;  %v1467_v35 = vshll.u32 %v1436_v9, 16 }
 0x12a   : > { %p3194_p3 = pnand %p3193_p2, %p3189_p13 }
 0x12b   : > { %v1466_v50 = vrot.slane %v1464_v48, 4  ;;  %v1469_v49 = vrot.slane %v1467_v35, 5 }
 0x12c   : > { %1969 = vmatpush.bf16.msrb.mxu0 %v3057_v26  ;;  %1997 = vmatpush.bf16.msra.mxu1 %v3066_v23 }
 0x12d   : > { %v4348_v7 = vor.u32 %v1469_v49, %v1466_v50 }
 0x12e   : > { %v1538_v33 = vpop.permute.xlu2 %1537 }
 0x12f   : > { %v4355_v15 = vsel %vm4830_vm7, %v1461_v0, %v4348_v7 }
 0x130   : > { %1970 = vmatpush.bf16.msrb.mxu0 %v3056_v5  ;;  %1998 = vmatpush.bf16.msra.mxu1 %v3065_v57 }
 0x134   : > { %1971 = vmatpush.bf16.msrb.mxu0 %v3055_v34  ;;  %1999 = vmatpush.bf16.msra.mxu1 %v3064_v6 }
 0x136   : > { %v1424_v2 = vpop.permute.xlu2 %1423 }
 0x138   : > { %1972 = vmatpush.bf16.msrb.mxu0 %v3054_v52  ;;  %2000 = vmatpush.bf16.msra.mxu1 %v3063_v17 }
 0x13c   : > { %2001 = vmatpush.bf16.msra.mxu1 %v3062_v16 }
 0x13f   : > { %v1389_v32 = vpop.permute.xlu1 %1388 }
 0x142   : > { %v1346_v47 = vpop.permute.xlu0 %1345 }
 0x143   : > { %v1604_v43 = vsel %vm1601_vm2, %v1285_v59, %v1346_v47 }
 0x144   : > { %v1619_v38 = vsel %vm1617_vm10, %v1604_v43, %v1389_v32 }
 0x145   : > { %v1630_v58 = vsel %vm1628_vm6, %v1619_v38, %v1422_v36 }
 0x146   : > { %v1715_v63 = vshrl.u32 %v1630_v58, 16  ;;  %v1718_v42 = vshll.u32 %v1630_v58, 16 }
 0x148   : > { %v1717_v22 = vrot.slane %v1715_v63, 3  ;;  %v1720_v0 = vrot.slane %v1718_v42, 4 }
 0x14a   : > { %v1505_v28 = vpop.permute.xlu0 %1504  ;;  %v1721_v13 = vor.u32 %v1720_v0, %v1717_v22 }
 0x14b   : > { %v1641_v29 = vsel %vm1601_vm2, %v4278_v1, %v1505_v28 }
 0x14c   : > { %v1655_v5 = vsel %vm1617_vm10, %v1641_v29, %v1538_v33 }
 0x14f   : > { %v1562_v56 = vpop.permute.xlu2 %1561 }
 0x151   : > { %v1391_v25 = vpop.permute.xlu1 %1390 }
 0x156   : > { %v1348_v27 = vpop.permute.xlu0 %1347 }
 0x157   : > { %v1607_v12 = vsel %vm1601_vm2, %v1286_v21, %v1348_v27  ;;  %v1426_v60 = vpop.permute.xlu2 %1425 }
 0x158   : > { %v1621_v62 = vsel %vm1617_vm10, %v1607_v12, %v1391_v25 }
 0x159   : > { %v1632_v54 = vsel %vm1628_vm6, %v1621_v62, %v1424_v2 }
 0x15a   : > { %v1722_v14 = vshrl.u32 %v1632_v54, 16  ;;  %v1725_v8 = vshll.u32 %v1632_v54, 16  ;;  %v1507_v30 = vpop.permute.xlu1 %1506 }
 0x15b   : > { %v1644_v48 = vsel %vm1601_vm2, %v4307_v39, %v1507_v30 }
 0x15c   : > { %v1724_v9 = vrot.slane %v1722_v14, 3  ;;  %v1727_v10 = vrot.slane %v1725_v8, 4 }
 0x15e   : > { %v1540_v35 = vpop.permute.xlu0 %1539  ;;  %v1728_v50 = vor.u32 %v1727_v10, %v1724_v9 }
 0x15f   : > { %v1657_v31 = vsel %vm1617_vm10, %v1644_v48, %v1540_v35 }
 0x160   : > { %v1667_v21 = vsel %vm1628_vm6, %v1657_v31, %v1562_v56  ;;  %v1729_v49 = vsel %vm1714_vm14, %v1721_v13, %v1728_v50  ;;  %v1564_v53 = vpop.permute.xlu2 %1563  ;;  %v1284_v31 = vunpack.c.l.b16 %v1045_v24 }
 0x161   : > { %v1737_v18 = vshrl.u32 %v1667_v21, 16  ;;  %v1740_v26 = vshll.u32 %v1667_v21, 16  ;;  %1973 = vmatmul.bf16.vlgmr.msrb.gmra.mxu0 %v1729_v49 }
 0x162   : > { %v1560_v36 = vpop.permute.xlu1 %1559 }
 0x163   : > { %v1665_v39 = vsel %vm1628_vm6, %v1655_v5, %v1560_v36  ;;  %v1739_v23 = vrot.slane %v1737_v18, 3  ;;  %v1742_v34 = vrot.slane %v1740_v26, 4  ;;  %v1289_v5 = vpack.c.b16 %v1284_v31, %v1284_v31 }
 0x164   : > { %v1730_v57 = vshrl.u32 %v1665_v39, 16  ;;  %v1733_v19 = vshll.u32 %v1665_v39, 16 }
 0x165   : > { %v1743_v61 = vor.u32 %v1742_v34, %v1739_v23 }
 0x166   : > { %v1732_v1 = vrot.slane %v1730_v57, 3  ;;  %v1735_v52 = vrot.slane %v1733_v19, 4 }
 0x167   : > { %v1350_v55 = vpop.permute.xlu0 %1349 }
 0x168   : > { %v1736_v51 = vor.u32 %v1735_v52, %v1732_v1  ;;  %v1610_v47 = vsel %vm1601_vm2, %v1287_v45, %v1350_v55 }
 0x169   : > { %v1428_v58 = vpop.permute.xlu2 %1427 }
 0x16a   : > { %v1393_v11 = vpop.permute.xlu1 %1392  ;;  %v1744_v33 = vsel %vm1714_vm14, %v1736_v51, %v1743_v61 }
 0x16b   : > { %v1623_v6 = vsel %vm1617_vm10, %v1610_v47, %v1393_v11  ;;  %2002 = vmatmul.bf16.vlgmr.msra.gmra.mxu1 %v1744_v33 }
 0x16c   : > { %v1634_v17 = vsel %vm1628_vm6, %v1623_v6, %v1426_v60 }
 0x16d   : > { %v1762_v59 = vshrl.u32 %v1634_v17, 16  ;;  %v1765_v32 = vshll.u32 %v1634_v17, 16 }
 0x16f   : > { %v1509_v16 = vpop.permute.xlu0 %1508  ;;  %v1764_v28 = vrot.slane %v1762_v59, 3  ;;  %v1767_v43 = vrot.slane %v1765_v32, 4 }
 0x170   : > { %v1647_v41 = vsel %vm1601_vm2, %v4324_v40, %v1509_v16 }
 0x171   : > { %v1768_v2 = vor.u32 %v1767_v43, %v1764_v28  ;;  %v1566_v10 = vpop.permute.xlu2 %1565 }
 0x172   : > { %v1542_v4 = vpop.permute.xlu1 %1541 }
 0x173   : > { %v1659_v45 = vsel %vm1617_vm10, %v1647_v41, %v1542_v4  ;;  %v1769_v38 = vsel %vm1714_vm14, %v1728_v50, %v1768_v2 }
 0x174   : > { %v1669_v25 = vsel %vm1628_vm6, %v1659_v45, %v1564_v53  ;;  %1978 = vmatmul.bf16.gmra.mxu0 %v1769_v38 }
 0x175   : > { %v1770_v63 = vshrl.u32 %v1669_v25, 16  ;;  %v1773_v42 = vshll.u32 %v1669_v25, 16 }
 0x177   : > { %v1772_v56 = vrot.slane %v1770_v63, 3  ;;  %v1775_v12 = vrot.slane %v1773_v42, 4 }
 0x178   : > { %v1352_v27 = vpop.permute.xlu0 %1351 }
 0x179   : > { %v1776_v62 = vor.u32 %v1775_v12, %v1772_v56  ;;  %v1613_v40 = vsel %vm1601_vm2, %v1288_v44, %v1352_v27 }
 0x17b   : > { %v1395_v54 = vpop.permute.xlu1 %1394  ;;  %v1777_v0 = vsel %vm1714_vm14, %v1743_v61, %v1776_v62  ;;  %v2032_v43 = vpop.f32.mrf.mxu2 }
 0x17c   : > { %v1625_v22 = vsel %vm1617_vm10, %v1613_v40, %v1395_v54  ;;  %2007 = vmatmul.bf16.gmra.mxu1 %v1777_v0 }
 0x17d   : > { %v1636_v14 = vsel %vm1628_vm6, %v1625_v22, %v1428_v58 }
 0x17e   : > { %v1787_v8 = vshrl.u32 %v1636_v14, 16  ;;  %v1790_v30 = vshll.u32 %v1636_v14, 16 }
 0x180   : > { %v1511_v9 = vpop.permute.xlu0 %1510  ;;  %v1789_v48 = vrot.slane %v1787_v8, 3  ;;  %v1792_v35 = vrot.slane %v1790_v30, 4 }
 0x181   : > { %v1650_v20 = vsel %vm1601_vm2, %v4355_v15, %v1511_v9  ;;  %v1430_v15 = vpop.permute.xlu2 %1429 }
 0x182   : > { %v1793_v13 = vor.u32 %v1792_v35, %v1789_v48 }
 0x183   : > { %v1544_v46 = vpop.permute.xlu1 %1543  ;;  %v2034_v41 = vpop.f32.mrf.mxu2 }
 0x184   : > { %v1661_v44 = vsel %vm1617_vm10, %v1650_v20, %v1544_v46  ;;  %v1794_v50 = vsel %vm1714_vm14, %v1768_v2, %v1793_v13 }
 0x185   : > { %v1671_v29 = vsel %vm1628_vm6, %v1661_v44, %v1566_v10  ;;  %1983 = vmatmul.bf16.gmra.mxu0 %v1794_v50 }
 0x186   : > { %v1795_v21 = vshrl.u32 %v1671_v29, 16  ;;  %v1798_v49 = vshll.u32 %v1671_v29, 16 }
 0x188   : > { %v1354_v60 = vpop.permute.xlu0 %1353  ;;  %v1797_v18 = vrot.slane %v1795_v21, 3  ;;  %v1800_v26 = vrot.slane %v1798_v49, 4 }
 0x189   : > { %v1616_v39 = vsel %vm1601_vm2, %v1289_v5, %v1354_v60  ;;  %v1568_v47 = vpop.permute.xlu2 %1567 }
 0x18a   : > { %v1801_v36 = vor.u32 %v1800_v26, %v1797_v18 }
 0x18c   : > { %v1397_v23 = vpop.permute.xlu1 %1396  ;;  %v1802_v57 = vsel %vm1714_vm14, %v1776_v62, %v1801_v36  ;;  %v2037_v42 = vpop.f32.mrf.mxu2 }
 0x18d   : > { %v1627_v34 = vsel %vm1617_vm10, %v1616_v39, %v1397_v23  ;;  %2012 = vmatmul.bf16.gmra.mxu1 %v1802_v57 }
 0x18e   : > { %v1638_v3 = vsel %vm1628_vm6, %v1627_v34, %v1430_v15 }
 0x18f   : > { %v1812_v37 = vshrl.u32 %v1638_v3, 16  ;;  %v1815_v24 = vshll.u32 %v1638_v3, 16 }
 0x190   : > { %v1513_v52 = vpop.permute.xlu0 %1512 }
 0x191   : > { %v1814_v19 = vrot.slane %v1812_v37, 3  ;;  %v1817_v1 = vrot.slane %v1815_v24, 4  ;;  %v1653_v61 = vsel %vm1601_vm2, %v4348_v7, %v1513_v52  ;;  %v3167_v7 = vld [vmem:[%s4690_s4] ss:$0 sm:$0xff] }
 0x193   : > { %v1818_v55 = vor.u32 %v1817_v1, %v1814_v19 }
 0x194   : > { %v1546_v51 = vpop.permute.xlu1 %1545  ;;  %v2039_v62 = vpop.f32.mrf.mxu2 }
 0x195   : > { %v1663_v11 = vsel %vm1617_vm10, %v1653_v61, %v1546_v51  ;;  %v1819_v33 = vsel %vm1714_vm14, %v1793_v13, %v1818_v55 }
 0x196   : > { %v1673_v53 = vsel %vm1628_vm6, %v1663_v11, %v1568_v47  ;;  %1988 = vmatmul.bf16.gmra.mxu0 %v1819_v33 }
 0x197   : > { %v1820_v6 = vshrl.u32 %v1673_v53, 16  ;;  %v1823_v17 = vshll.u32 %v1673_v53, 16 }
 0x199   : > { %v1822_v59 = vrot.slane %v1820_v6, 3  ;;  %v1825_v32 = vrot.slane %v1823_v17, 4  ;;  %v2885_v17 = vld [vmem:[%s4692_s6 + $0x60] sm:$0xf] }
 0x19b   : > { %v1826_v16 = vor.u32 %v1825_v32, %v1822_v59  ;;  %v3086_v59 = vld [vmem:[%s4692_s6 + $0x6c] sm:$0xf0] }
 0x19c   : > { %v2042_v22 = vpop.f32.mrf.mxu2 }
 0x19d   : > { %v1827_v28 = vsel %vm1714_vm14, %v1801_v36, %v1826_v16  ;;  %v2886_v16 = vor.u32 %v3086_v59, %v2885_v17  ;;  %v3117_v17 = vld [vmem:[%s4694_s8 + $0xe8] sm:$0xff]  ;;  %vm4833_vm14 = vcmask 257024  }
 0x19e   : > { %2017 = vmatmul.bf16.gmra.mxu1 %v1827_v28  ;;  %v3093_v59 = vld [vmem:[%s4694_s8 + $0x28] sm:$0xff] }
 0x1a4   : > { %v2044_v8 = vpop.f32.mrf.mxu2 }
 0x1ac   : > { %v2047_v10 = vpop.f32.mrf.mxu2 }
 0x1b4   : > { %v2049_v26 = vpop.f32.mrf.mxu2 }
 0x1de   : > { %v1974_v2 = vpop.f32.mrf.mxu0 }
 0x1df   : > { %v1975_v4 = vadd.f32 %v3167_v7, %v1974_v2  ;;  %v3082_v2 = vld [vmem:[%s4692_s6 + $0x4c] sm:$0xf0] }
 0x1e6   : > { %v1976_v38 = vpop.f32.mrf.mxu0 }
 0x1e7   : > { %v1977_v23 = vadd.f32 %v3167_v7, %v1976_v38 }
 0x1e8   : > { %v2003_v45 = vpop.f32.mrf.mxu1 }
 0x1e9   : > { %v2004_v25 = vadd.f32 %v2003_v45, %v1975_v4  ;;  %v2853_v4 = vld [vmem:[%s4692_s6 + $0x20] sm:$0xf]  ;;  %v3078_v45 = vld [vmem:[%s4692_s6 + $0x2c] sm:$0xf0] }
 0x1ea   : > { %v2854_v38 = vor.u32 %v3078_v45, %v2853_v4  ;;  %v3091_v4 = vld [vmem:[%s4694_s8 + $0x18] sm:$0xff]  ;;  %v3098_v45 = vld [vmem:[%s4694_s8 + $0x50] sm:$0xff] }
 0x1eb   : > { %v2033_v58 = vadd.f32 %v2032_v43, %v2004_v25  ;;  %v2869_v43 = vld [vmem:[%s4692_s6 + $0x40] sm:$0xf] }
 0x1ec   : > { %v2837_v25 = vld [vmem:[%s4692_s6] sm:$0xf] }
 0x1ed   : > { %v2052_v32 = vmax.f32 %v2033_v58, 0.0  ;;  %v3074_v58 = vld [vmem:[%s4692_s6 + $0xc] sm:$0xf0] }
 0x1f0   : > { %v2005_v63 = vpop.f32.mrf.mxu1 }
 0x1f1   : > { %v1979_v27 = vpop.f32.mrf.mxu0  ;;  %v2006_v24 = vadd.f32 %v2005_v63, %v1977_v23  ;;  %v2838_v63 = vor.u32 %v3074_v58, %v2837_v25  ;;  %v2861_v23 = vld [vmem:[%s4692_s6 + $0x28] sm:$0xf]  ;;  %v3106_v58 = vld [vmem:[%s4694_s8 + $0x90] sm:$0xff] }
 0x1f2   : > { %v1980_v5 = vadd.f32 %v3167_v7, %v1979_v27  ;;  %v2887_v27 = vld [vmem:[%s4692_s6 + $0x70] sm:$0xf0] }
 0x1f3   : > { %v2035_v51 = vadd.f32 %v2034_v41, %v2006_v24  ;;  %v2870_v41 = vor.u32 %v3082_v2, %v2869_v43  ;;  %v3075_v24 = vld [vmem:[%s4692_s6 + $0x14] sm:$0xf0]  ;;  %v3092_v43 = vld [vmem:[%s4694_s8 + $0x20] sm:$0xff] }
 0x1f4   : > { %v3099_v2 = vld [vmem:[%s4694_s8 + $0x58] sm:$0xff] }
 0x1f5   : > { %v2053_v53 = vmax.f32 %v2035_v51, 0.0  ;;  %v3102_v51 = vld [vmem:[%s4694_s8 + $0x70] sm:$0xff] }
 0x1f7   : > { %v2060_v28 = vpack.c.bf16 %v2053_v53, %v2052_v32  ;;  %v3101_v53 = vld [vmem:[%s4694_s8 + $0x68] sm:$0xff]  ;;  %v3100_v32 = vld [vmem:[%s4694_s8 + $0x60] sm:$0xff] }
 0x1f9   : > { %v1981_v56 = vpop.f32.mrf.mxu0  ;;  %v2008_v12 = vpop.f32.mrf.mxu1 }
 0x1fa   : > { %v1982_v21 = vadd.f32 %v3167_v7, %v1981_v56  ;;  %v2009_v34 = vadd.f32 %v2008_v12, %v1980_v5  ;;  %v3080_v56 = vld [vmem:[%s4692_s6 + $0x44] sm:$0xf]  ;;  %v3073_v5 = vld [vmem:[%s4692_s6 + $0xc] sm:$0xf] }
 0x1fc   : > { %v2038_v55 = vadd.f32 %v2037_v42, %v2009_v34  ;;  %v3084_v42 = vld [vmem:[%s4692_s6 + $0x64] sm:$0xf]  ;;  %v3079_v34 = vld [vmem:[%s4692_s6 + $0x34] sm:$0xf0] }
 0x1fd   : > { %v2890_v12 = vor.u32 %v3084_v42, %v2887_v27  ;;  %v3090_v27 = vld [vmem:[%s4694_s8 + $0x10] sm:$0xff] }
 0x1fe   : > { %v2054_v33 = vmax.f32 %v2038_v55, 0.0  ;;  %v3119_v55 = vld [vmem:[%s4694_s8 + $0xf8] sm:$0xff] }
 0x201   : > { %v2010_v54 = vpop.f32.mrf.mxu1 }
 0x202   : > { %v1984_v40 = vpop.f32.mrf.mxu0  ;;  %v2011_v15 = vadd.f32 %v2010_v54, %v1982_v21  ;;  %v3076_v54 = vld [vmem:[%s4692_s6 + $0x24] sm:$0xf] }
 0x203   : > { %v1985_v44 = vadd.f32 %v3167_v7, %v1984_v40 }
 0x204   : > { %v2040_v19 = vadd.f32 %v2039_v62, %v2011_v15  ;;  %v2871_v62 = vld [vmem:[%s4692_s6 + $0x50] sm:$0xf0]  ;;  %v2847_v15 = vld [vmem:[%s4692_s6 + $0x18] sm:$0xf0] }
 0x205   : > { %v2874_v40 = vor.u32 %v3080_v56, %v2871_v62  ;;  %v3097_v56 = vld [vmem:[%s4694_s8 + $0x48] sm:$0xff] }
 0x206   : > { %v2055_v47 = vmax.f32 %v2040_v19, 0.0 }
 0x208   : > { %v2061_v6 = vpack.c.bf16 %v2055_v47, %v2054_v33  ;;  %v3110_v47 = vld [vmem:[%s4694_s8 + $0xb0] sm:$0xff] }
 0x209   : > { %v3094_v33 = vld [vmem:[%s4694_s8 + $0x30] sm:$0xff] }
 0x20a   : > { %v1986_v0 = vpop.f32.mrf.mxu0  ;;  %v2013_v14 = vpop.f32.mrf.mxu1 }
 0x20b   : > { %v1987_v20 = vadd.f32 %v3167_v7, %v1986_v0  ;;  %v2014_v49 = vadd.f32 %v2013_v14, %v1985_v44  ;;  %v3072_v14 = vld [vmem:[%s4692_s6 + $0x4] sm:$0xf]  ;;  %v2863_v44 = vld [vmem:[%s4692_s6 + $0x38] sm:$0xf0] }
 0x20d   : > { %v2043_v57 = vadd.f32 %v2042_v22, %v2014_v49  ;;  %v2855_v22 = vld [vmem:[%s4692_s6 + $0x30] sm:$0xf0] }
 0x20e   : > { %v2858_v0 = vor.u32 %v3076_v54, %v2855_v22  ;;  %v3105_v54 = vld [vmem:[%s4694_s8 + $0x88] sm:$0xff] }
 0x20f   : > { %v2056_v61 = vmax.f32 %v2043_v57, 0.0  ;;  %v2862_v57 = vor.u32 %v3079_v34, %v2861_v23  ;;  %v3113_v22 = vld [vmem:[%s4694_s8 + $0xc8] sm:$0xff] }
 0x212   : > { %v2015_v30 = vpop.f32.mrf.mxu1 }
 0x213   : > { %v1989_v9 = vpop.f32.mrf.mxu0  ;;  %v2016_v50 = vadd.f32 %v2015_v30, %v1987_v20 }
 0x214   : > { %v1990_v35 = vadd.f32 %v3167_v7, %v1989_v9  ;;  %v3085_v9 = vld [vmem:[%s4692_s6 + $0x6c] sm:$0xf] }
 0x215   : > { %v2045_v36 = vadd.f32 %v2044_v8, %v2016_v50  ;;  %v2839_v8 = vld [vmem:[%s4692_s6 + $0x10] sm:$0xf0] }
 0x216   : > { %v2842_v30 = vor.u32 %v3072_v14, %v2839_v8  ;;  %v3096_v14 = vld [vmem:[%s4694_s8 + $0x40] sm:$0xff] }
 0x217   : > { %v2057_v1 = vmax.f32 %v2045_v36, 0.0 }
 0x219   : > { %v2062_v11 = vpack.c.bf16 %v2057_v1, %v2056_v61  ;;  %v3103_v1 = vld [vmem:[%s4694_s8 + $0x78] sm:$0xff] }
 0x21a   : > { %2524 = vmatpush.bf16.msra.mxu2 %v3103_v1  ;;  %v3095_v61 = vld [vmem:[%s4694_s8 + $0x38] sm:$0xff] }
 0x21b   : > { %v2018_v48 = vpop.f32.mrf.mxu1  ;;  %v1991_v13 = vpop.f32.mrf.mxu0  ;;  %2511 = vmatpush.bf16.msrb.mxu1 %v3095_v61 }
 0x21c   : > { %v2019_v46 = vadd.f32 %v2018_v48, %v1990_v35  ;;  %v1992_v29 = vadd.f32 %v3167_v7, %v1991_v13  ;;  %v2064_v7 = vld [vmem:[%s4691_s5] sm:$0x3]  ;;  %v3081_v35 = vld [vmem:[%s4692_s6 + $0x4c] sm:$0xf]  ;;  %v2879_v13 = vld [vmem:[%s4692_s6 + $0x58] sm:$0xf0] }
 0x21d   : > { %v2882_v20 = vor.u32 %v3081_v35, %v2879_v13  ;;  %v3088_v35 = vld [vmem:[%s4694_s8] sm:$0xff] }
 0x21e   : > { %v2048_v60 = vadd.f32 %v2047_v10, %v2019_v46  ;;  %v2895_v10 = vld [vmem:[%s4692_s6 + $0x78] sm:$0xf0]  ;;  %v3077_v46 = vld [vmem:[%s4692_s6 + $0x2c] sm:$0xf]  ;;  %2525 = vmatpush.bf16.msra.mxu2 %v3102_v51 }
 0x21f   : > { %v2898_v48 = vor.u32 %v3085_v9, %v2895_v10  ;;  %v2866_v50 = vor.u32 %v3077_v46, %v2863_v44  ;;  %2512 = vmatpush.bf16.msrb.mxu1 %v3094_v33  ;;  %v3104_v9 = vld [vmem:[%s4694_s8 + $0x80] sm:$0xff] }
 0x220   : > { %v2058_v3 = vmax.f32 %v2048_v60, 0.0  ;;  %v3112_v10 = vld [vmem:[%s4694_s8 + $0xc0] sm:$0xff] }
 0x221   : > { %2234 = vmatpush.bf16.msra.mxu0 %v2898_v48 }
 0x222   : > { %2526 = vmatpush.bf16.msra.mxu2 %v3101_v53 }
 0x223   : > { %v2020_v31 = vpop.f32.mrf.mxu1  ;;  %2513 = vmatpush.bf16.msrb.mxu1 %v3093_v59 }
 0x224   : > { %v2021_v18 = vadd.f32 %v2020_v31, %v1992_v29  ;;  %v2893_v29 = vld [vmem:[%s4692_s6 + $0x68] sm:$0xf]  ;;  %v3087_v31 = vld [vmem:[%s4692_s6 + $0x74] sm:$0xf0] }
 0x225   : > { %2235 = vmatpush.bf16.msra.mxu0 %v2882_v20  ;;  %v2894_v49 = vor.u32 %v3087_v31, %v2893_v29 }
 0x226   : > { %v2050_v39 = vadd.f32 %v2049_v26, %v2021_v18  ;;  %v2877_v18 = vld [vmem:[%s4692_s6 + $0x48] sm:$0xf]  ;;  %v3083_v26 = vld [vmem:[%s4692_s6 + $0x54] sm:$0xf0]  ;;  %2527 = vmatpush.bf16.msra.mxu2 %v3100_v32 }
 0x227   : > { %v2878_v36 = vor.u32 %v3083_v26, %v2877_v18  ;;  %2514 = vmatpush.bf16.msrb.mxu1 %v3092_v43 }
 0x228   : > { %v2059_v37 = vmax.f32 %v2050_v39, 0.0  ;;  %v2850_v39 = vor.u32 %v3073_v5, %v2847_v15 }
 0x229   : > { %2236 = vmatpush.bf16.msra.mxu0 %v2866_v50 }
 0x22a   : > { %v2063_v52 = vpack.c.bf16 %v2059_v37, %v2058_v3  ;;  %v2845_v37 = vld [vmem:[%s4692_s6 + $0x8] sm:$0xf]  ;;  %2528 = vmatpush.bf16.msra.mxu2 %v3099_v2 }
 0x22b   : > { %v2846_v19 = vor.u32 %v3075_v24, %v2845_v37  ;;  %2515 = vmatpush.bf16.msrb.mxu1 %v3091_v4 }
 0x22c   : > { %2072 = vmatpush.bf16.msrb.mxu3 %v2063_v52  ;;  %v3111_v52 = vld [vmem:[%s4694_s8 + $0xb8] sm:$0xff] }
 0x22d   : > { %2237 = vmatpush.bf16.msra.mxu0 %v2850_v39 }
 0x22e   : > { %2529 = vmatpush.bf16.msra.mxu2 %v3098_v45 }
 0x22f   : > { %2516 = vmatpush.bf16.msrb.mxu1 %v3090_v27 }
 0x230   : > { %2073 = vmatpush.bf16.msrb.mxu3 %v2062_v11  ;;  %v3118_v11 = vld [vmem:[%s4694_s8 + $0xf0] sm:$0xff] }
 0x231   : > { %2550 = vmatpush.bf16.msrb.mxu0 %v3119_v55 }
 0x232   : > { %2530 = vmatpush.bf16.msra.mxu2 %v3097_v56 }
 0x234   : > { %2074 = vmatpush.bf16.msrb.mxu3 %v2061_v6  ;;  %v3109_v6 = vld [vmem:[%s4694_s8 + $0xa8] sm:$0xff] }
 0x235   : > { %2551 = vmatpush.bf16.msrb.mxu0 %v3118_v11 }
 0x236   : > { %2531 = vmatpush.bf16.msra.mxu2 %v3096_v14 }
 0x238   : > { %2075 = vmatpush.bf16.msrb.mxu3 %v2060_v28  ;;  %v3116_v28 = vld [vmem:[%s4694_s8 + $0xe0] sm:$0xff] }
 0x239   : > { %2552 = vmatpush.bf16.msrb.mxu0 %v3117_v17 }
 0x23b   : > { %2834 = vmatmul.msk.bf16.vlgmr.msrb.gmra.mxu3 %vm1617_vm10, %v2064_v7  ;;  %v3107_v7 = vld [vmem:[%s4694_s8 + $0x98] sm:$0xff] }
 0x23c   : > { %2195 = vmatpush.bf16.msra.mxu3 %v2886_v16  ;;  %v3108_v16 = vld [vmem:[%s4694_s8 + $0xa0] sm:$0xff] }
 0x23d   : > { %2553 = vmatpush.bf16.msrb.mxu0 %v3116_v28 }
 0x240   : > { %2196 = vmatpush.bf16.msra.mxu3 %v2870_v41  ;;  %v3115_v41 = vld [vmem:[%s4694_s8 + $0xd8] sm:$0xff] }
 0x241   : > { %2554 = vmatpush.bf16.msrb.mxu0 %v3115_v41 }
 0x244   : > { %2197 = vmatpush.bf16.msra.mxu3 %v2854_v38  ;;  %v2098_v38 = vld [vmem:[%s4693_s7] sm:$0xf] }
 0x245   : > { %v2100_v25 = vperm.slane %v2098_v38, 0  ;;  %v2103_v62 = vperm.slane %v2098_v38, 3  ;;  %v2101_v44 = vperm.slane %v2098_v38, 1  ;;  %v2102_v18 = vperm.slane %v2098_v38, 2 }
 0x248   : > { %2198 = vmatpush.bf16.msra.mxu3 %v2838_v63  ;;  %v3114_v63 = vld [vmem:[%s4694_s8 + $0xd0] sm:$0xff] }
 0x249   : > { %2555 = vmatpush.bf16.msrb.mxu0 %v3114_v63 }
 0x24c   : > { %2208 = vmatpush.bf16.msrb.mxu3 %v2890_v12 }
 0x24d   : > { %2556 = vmatpush.bf16.msrb.mxu0 %v3113_v22 }
 0x250   : > { %2209 = vmatpush.bf16.msrb.mxu3 %v2874_v40 }
 0x251   : > { %2557 = vmatpush.bf16.msrb.mxu0 %v3112_v10 }
 0x254   : > { %2210 = vmatpush.bf16.msrb.mxu3 %v2858_v0  ;;  %v3089_v0 = vld [vmem:[%s4694_s8 + $0x8] sm:$0xff] }
 0x255   : > { %2517 = vmatpush.bf16.msrb.mxu1 %v3089_v0 }
 0x258   : > { %2211 = vmatpush.bf16.msrb.mxu3 %v2842_v30 }
 0x259   : > { %2518 = vmatpush.bf16.msrb.mxu1 %v3088_v35 }
 0x2be   : > { %v2077_v21 = vpop.f32.mrf.mxu3 }
 0x2bf   : > { %v2081_v60 = vpack.c.bf16 %v2077_v21, %v2077_v21 }
 0x2c1   : > { %2899 = vmatmul.msk.bf16.vlgmr.msra.gmra.mxu3 %vm1617_vm10, %v2081_v60  ;;  %2902 = vmatmul.msk.bf16.vlgmr.msra.gmra.mxu0 %vm1617_vm10, %v2081_v60 }
 0x2c2   : > { %2221 = vmatpush.bf16.msra.mxu3 %v2894_v49 }
 0x2c6   : > { %2222 = vmatpush.bf16.msra.mxu3 %v2878_v36  ;;  %v2079_v3 = vpop.f32.mrf.mxu3 }
 0x2ca   : > { %2223 = vmatpush.bf16.msra.mxu3 %v2862_v57 }
 0x2ce   : > { %2224 = vmatpush.bf16.msra.mxu3 %v2846_v19  ;;  %v3168_v19 = vld [vmem:[%s4695_s9] ss:$0 sm:$0xff] }
 0x2d1   : > { %2900 = vmatmul.msk.bf16.vlgmr.msrb.gmra.mxu3 %vm1617_vm10, %v2081_v60 }
 0x2d2   : > { %2537 = vmatpush.bf16.msrb.mxu3 %v3111_v52 }
 0x2d6   : > { %2538 = vmatpush.bf16.msrb.mxu3 %v3110_v47 }
 0x2da   : > { %2539 = vmatpush.bf16.msrb.mxu3 %v3109_v6 }
 0x2de   : > { %2540 = vmatpush.bf16.msrb.mxu3 %v3108_v16 }
 0x2e1   : > { %2901 = vmatmul.msk.bf16.vlgmr.msra.gmra.mxu3 %vm1617_vm10, %v2081_v60 }
 0x2e2   : > { %2541 = vmatpush.bf16.msrb.mxu3 %v3107_v7 }
 0x2e6   : > { %2542 = vmatpush.bf16.msrb.mxu3 %v3106_v58 }
 0x2ea   : > { %2543 = vmatpush.bf16.msrb.mxu3 %v3105_v54 }
 0x2ee   : > { %2544 = vmatpush.bf16.msrb.mxu3 %v3104_v9 }
 0x33e   : > { %v2239_v40 = vpop.f32.mrf.mxu0 }
 0x33f   : > { %v2240_v30 = vadd.f32 %v2239_v40, %v2103_v62 }
 0x341   : > { %v2246_v13 = vmax.f32 %v2240_v30, 0.0 }
 0x343   : > { %v2250_v46 = vpack.c.bf16 %v2246_v13, %v2246_v13 }
 0x344   : > { %v2200_v42 = vpop.f32.mrf.mxu3 }
 0x345   : > { %v2201_v12 = vadd.f32 %v2200_v42, %v2100_v25  ;;  %2558 = vmatmul.bf16.vlgmr.msrb.gmra.mxu0 %v2250_v46 }
 0x346   : > { %v2241_v50 = vpop.f32.mrf.mxu0 }
 0x347   : > { %v2243_v8 = vmax.f32 %v2201_v12, 0.0 }
 0x349   : > { %v2247_v20 = vpack.c.bf16 %v2243_v8, %v2243_v8 }
 0x34b   : > { %2519 = vmatmul.bf16.vlgmr.msrb.gmra.mxu1 %v2247_v20 }
 0x34c   : > { %v2202_v48 = vpop.f32.mrf.mxu3 }
 0x354   : > { %v2213_v29 = vpop.f32.mrf.mxu3 }
 0x355   : > { %v2214_v31 = vadd.f32 %v2213_v29, %v2101_v44 }
 0x357   : > { %v2244_v21 = vmax.f32 %v2214_v31, 0.0 }
 0x359   : > { %v2248_v49 = vpack.c.bf16 %v2244_v21, %v2244_v21 }
 0x35b   : > { %2532 = vmatmul.bf16.vlgmr.msra.gmra.mxu2 %v2248_v49 }
 0x35c   : > { %v2215_v60 = vpop.f32.mrf.mxu3 }
 0x364   : > { %v2226_v26 = vpop.f32.mrf.mxu3 }
 0x365   : > { %v2227_v5 = vadd.f32 %v2226_v26, %v2102_v18 }
 0x367   : > { %v2245_v15 = vmax.f32 %v2227_v5, 0.0 }
 0x369   : > { %v2249_v36 = vpack.c.bf16 %v2245_v15, %v2245_v15 }
 0x36b   : > { %2545 = vmatmul.bf16.vlgmr.msrb.gmra.mxu3 %v2249_v36 }
 0x36c   : > { %v2228_v39 = vpop.f32.mrf.mxu3 }
 0x3c2   : > { %v2559_v23 = vpop.f32.mrf.mxu0 }
 0x3c8   : > { %v2520_v34 = vpop.f32.mrf.mxu1 }
 0x3c9   : > { %v2521_v1 = vadd.f32 %v3168_v19, %v2520_v34 }
 0x3ca   : > { %v2561_v57 = vpop.f32.mrf.mxu0 }
 0x3d0   : > { %v2522_v3 = vpop.f32.mrf.mxu1 }
 0x3de   : > { %v2533_v37 = vpop.f32.mrf.mxu2 }
 0x3df   : > { %v2534_v52 = vadd.f32 %v2533_v37, %v2521_v1 }
 0x3e6   : > { %v2535_v24 = vpop.f32.mrf.mxu2 }
 0x3ee   : > { %v2546_v55 = vpop.f32.mrf.mxu3 }
 0x3ef   : > { %v2547_v61 = vadd.f32 %v2546_v55, %v2534_v52 }
 0x3f1   : > { %v2560_v51 = vadd.f32 %v2559_v23, %v2547_v61 }
 0x3f3   : > { %2563 = vst.msk [vmem:[%s352_s12] sm:$0xf] %vm4833_vm14, %v2560_v51 }
 0x3f4   : > { %3197 = shalt.err (!%p3194_p3)
}
 0x3f5   : > { %3123 = dma.vmem_to_hbm [thread:$0]  (%p3331_p5), %s2578_s18, 64, %s2580_s20, %s2565_s25  }
 0x3f6   : > { %v2548_v47 = vpop.f32.mrf.mxu3 }
 0x3f7 PF: > { %p3129_p4 = scmp.ge.s32.totalorder %s3232_s16, 2  ;;  %s2591_s21 = sand.u32 1, %s3220_s13  }
 0x3f8   : > { %s2592_s12 = scalar_lea.sflag [#allocation4], %s2591_s21 }
 0x3f9   : > { %p3126_p7 = pnand %p3129_p4, %p3335_p6 }
 0x3fb   : > { %p3127_p8 = pneg %p3126_p7 }
 0x3fd   : > { %3215 = dma.done.wait (%p3127_p8), %s2592_s12, 64  }
 0x3fe   : > { %3217 = vsyncadd (%p3127_p8), %s2592_s12, 4294967232  ;;  %p20_p9 = scmp.ge.s32.totalorder %s3318_s19, 4   ;;  %s4834_s13 = smov %s3224_s14 }
 0x3ff   : > { %s4835_s14 = smov %s3228_s15  ;;  %s4836_s15 = smov %s3329_s22 }
 0x400   : > { %s4837_s16 = smov %s3318_s19  ;;  %22 = sbr.rel (!%p20_p9) target bundleno = 3 (0x3), region = 98 }
 0x405   :  { %2598 = vsyncpa [#allocation4], 1 }
 0x406   :  { %2600 = vsyncpa [#allocation4 + $0x1], 1 }

</bundles_post_ra>
